<compile_context>
chip_gen: v5e
topology: v5e:2x2
jax: 0.10.0
libtpu: 0.0.40
codegen_flags: <defaults>
</compile_context>

<pallas_src>
import jax
import jax.numpy as jnp
from jax import lax
from jax.experimental import pallas as pl
from jax.experimental.pallas import tpu as pltpu


# -----------------------------------------------------------------------------
# Fused Pallas kernel
# -----------------------------------------------------------------------------
def make_fused_kernel(T, B, H, L):
    H2, H4, H6, H8 = 2 * H, 4 * H, 6 * H, 8 * H

    def kernel(*refs):
        # refs: x, (wa, wb, whh, b) * L, w_head, b_head, out,
        #       gxa_scratch, gxb_scratch, z_tb_scratch, z_bt_scratch
        x_ref = refs[0]                                   # (T*B, D_in), row = t*B + b
        lstm = [tuple(refs[1 + 4 * l: 5 + 4 * l]) for l in range(L)]
        wh_ref, bh_ref = refs[1 + 4 * L], refs[2 + 4 * L]
        out_ref = refs[3 + 4 * L]                         # (B, O)
        gxa_ref = refs[4 + 4 * L]                         # (T*B, 8H) fwd-gate input proj (+bias)
        gxb_ref = refs[5 + 4 * L]                         # (T*B, 8H) bwd-gate input proj
        ztb_ref = refs[6 + 4 * L]                         # (T*B, 2H) step-ordered layer output
        zbt_ref = refs[7 + 4 * L]                         # (B, T*2H) head-ready last-layer output

        for l in range(L):
            wa_ref, wb_ref, whh_ref, b_ref = lstm[l]
            last = (l == L - 1)

            # ---- batched input projection: ONE matmul per weight over all T
            # steps (16 rows), full-tile stores to scratch.  For layers >= 1 the
            # backward-time flip is already folded into wa/wb, so the
            # step-ordered ztb buffer is consumed as-is.
            xin = x_ref[...] if l == 0 else ztb_ref[...]  # (T*B, D_l)
            gxa_ref[...] = (
                jnp.dot(xin, wa_ref[...], preferred_element_type=jnp.float32)
                + b_ref[...])
            gxb_ref[...] = jnp.dot(xin, wb_ref[...], preferred_element_type=jnp.float32)

            whh = whh_ref[...]                            # (2H, 8H) block-diag recurrent weights

            # ---- serial recurrence: fwd + bwd batched in lanes, fully unrolled.
            # Gate-column layout (8H): [i_f i_b f_f f_b g_f g_b o_f o_b].
            # i/f/o columns were pre-scaled by 0.5 -> sigmoid = 0.5*tanh + 0.5.
            h = jnp.zeros((B, H2), jnp.float32)           # [h_fwd(s) | h_bwd(T-1-s)]
            c = jnp.zeros((B, H2), jnp.float32)
            for s in range(T):
                gates = gxa_ref[s * B:(s + 1) * B, :] + gxb_ref[(T - 1 - s) * B:(T - s) * B, :]
                if s > 0:
                    gates = gates + jnp.dot(h, whh, preferred_element_type=jnp.float32)
                t8 = jnp.tanh(gates)                      # single full-width EUP pass
                ig = (0.5 * t8[:, 0:H2] + 0.5) * t8[:, H4:H6]          # i * g
                c = ig if s == 0 else (0.5 * t8[:, H2:H4] + 0.5) * c + ig
                h = (0.5 * t8[:, H6:H8] + 0.5) * jnp.tanh(c)           # o * tanh(c)
                # one contiguous (B, 2H) store per step
                if last:
                    zbt_ref[:, s * H2:(s + 1) * H2] = h   # head-ready layout
                else:
                    ztb_ref[s * B:(s + 1) * B, :] = h     # step-ordered for next layer

        # ---- fused MLP head: fc2(fc1(flat)) folded offline into one matmul.
        out_ref[...] = (
            jnp.dot(zbt_ref[...], wh_ref[...], preferred_element_type=jnp.float32)
            + bh_ref[...])

    return kernel


def f0_forward(x, kparams, *, hidden_size, num_layers, output_size):
    """x: (B, T, input_size) batch-first, like the PyTorch module."""
    B, T, D = x.shape
    H = hidden_size
    x_flat = jnp.transpose(x, (1, 0, 2)).reshape(T * B, D)   # row = t*B + b
    inputs = [x_flat]
    for wa, wb, whh, b in kparams["lstm"]:
        inputs += [wa, wb, whh, b]
    inputs += list(kparams["head"])
    vmem = pl.BlockSpec(memory_space=pltpu.MemorySpace.VMEM)
    return pl.pallas_call(
        make_fused_kernel(T, B, H, num_layers),
        out_shape=jax.ShapeDtypeStruct((B, output_size), jnp.float32),
        in_specs=[vmem] * len(inputs),
        out_specs=vmem,
        scratch_shapes=[
            pltpu.VMEM((T * B, 8 * H), jnp.float32),      # gxa: fwd-gate input projections + bias
            pltpu.VMEM((T * B, 8 * H), jnp.float32),      # gxb: bwd-gate input projections
            pltpu.VMEM((T * B, 2 * H), jnp.float32),      # step-ordered inter-layer activations
            pltpu.VMEM((B, T * 2 * H), jnp.float32),      # head-ready last-layer activations
        ],
    )(*inputs)


# -----------------------------------------------------------------------------
# Parameter construction (PyTorch layout -> kernel layout)
# -----------------------------------------------------------------------------
def init_raw_params(key, input_size, H, L, O, T):
    """Raw PyTorch-style params: weight_ih (4H,D), weight_hh (4H,H), biases (4H,)."""
    k = 1.0 / jnp.sqrt(jnp.float32(H))

    def uni(kk, shape):
        return jax.random.uniform(kk, shape, jnp.float32, -k, k)

    keys = iter(jax.random.split(key, 8 * L * 2 + 4))
    lstm = []
    for l in range(L):
        d_in = input_size if l == 0 else 2 * H
        dirs = []
        for _ in range(2):                                # forward, backward
            w_ih = uni(next(keys), (4 * H, d_in))
            w_hh = uni(next(keys), (4 * H, H))
            b_ih = uni(next(keys), (4 * H,))
            b_hh = uni(next(keys), (4 * H,))
            dirs.append((w_ih, w_hh, b_ih, b_hh))
        lstm.append(dirs)
    F = 2 * H * T
    w1 = uni(next(keys), (H, F))
    b1 = uni(next(keys), (H,))
    w2 = uni(next(keys), (O, H))
    b2 = uni(next(keys), (O,))
    return {"lstm": lstm, "fc1": (w1, b1), "fc2": (w2, b2)}


def make_kernel_params(raw, H, T):
    """Block-diagonal, gate-interleaved, pre-scaled weights for the fused kernel.

    Gate-column layout (8H wide): [i_f i_b f_f f_b g_f g_b o_f o_b], each H wide.
    * layers >= 1: bwd-half input rows of wa/wb swapped so they consume the
      previous layer's STEP-ordered output directly (bwd time flip absorbed).
    * i/f/o columns scaled by 0.5 so sigmoid(g) == 0.5*tanh(g_scaled) + 0.5.
    * fc1 & fc2 fused into one (T*2H, O) weight, with its bwd-half row blocks
      time-reversed to match the step-ordered last-layer storage.
    """
    H2, H8 = 2 * H, 8 * H
    col = jnp.arange(H8)
    half = jnp.where((col >= 4 * H) & (col < 6 * H), 1.0, 0.5).astype(jnp.float32)

    lstm = []
    for li, layer in enumerate(raw["lstm"]):
        (wif, whf, bif, bhf), (wib, whb, bib, bhb) = layer
        D = wif.shape[1]
        wa = jnp.zeros((D, H8), jnp.float32)
        wb = jnp.zeros((D, H8), jnp.float32)
        whh = jnp.zeros((H2, H8), jnp.float32)
        bias = jnp.zeros((H8,), jnp.float32)
        bf = bif + bhf
        bw = bib + bhb
        for g in range(4):                                # PyTorch gate order: i, f, g, o
            cf = slice((2 * g) * H, (2 * g + 1) * H)      # fwd gate block columns
            cb = slice((2 * g + 1) * H, (2 * g + 2) * H)  # bwd gate block columns
            rg = slice(g * H, (g + 1) * H)                # gate rows in torch layout
            wa = wa.at[:, cf].set(wif[rg, :].T)
            wb = wb.at[:, cb].set(wib[rg, :].T)
            whh = whh.at[0:H, cf].set(whf[rg, :].T)
            whh = whh.at[H:H2, cb].set(whb[rg, :].T)
            bias = bias.at[cf].set(bf[rg])
            bias = bias.at[cb].set(bw[rg])
        if li > 0:
            # Input of layers >= 1 is step-ordered: z[s] = [h_f(s) | h_b(T-1-s)].
            # Swap the bwd-half input rows between wa and wb so
            # gx[s] = z[s] @ wa' + z[T-1-s] @ wb'.
            wa2 = jnp.concatenate([wa[0:H, :], wb[H:H2, :]], axis=0)
            wb2 = jnp.concatenate([wb[0:H, :], wa[H:H2, :]], axis=0)
            wa, wb = wa2, wb2
        # tanh-only sigmoid trick: 0.5 pre-scale on i/f/o columns only.
        wa = wa * half
        wb = wb * half
        whh = whh * half
        bias = bias * half
        lstm.append((wa, wb, whh, bias.reshape(1, H8)))

    # Fuse fc1 and fc2 offline (no nonlinearity in between).
    w1, b1 = raw["fc1"]                                   # (H, F), (H,)
    w2, b2 = raw["fc2"]                                   # (O, H), (O,)
    w_head = w1.T @ w2.T                                  # (F, O)
    b_head = b1 @ w2.T + b2                               # (O,)
    # Permute the bwd-half row blocks to match the step-ordered last-layer output.
    w_perm = w_head
    for s in range(T):
        dst = slice(s * H2 + H, (s + 1) * H2)
        src = slice((T - 1 - s) * H2 + H, (T - s) * H2)
        w_perm = w_perm.at[dst, :].set(w_head[src, :])
    head = (w_perm, b_head.reshape(1, -1))
    return {"lstm": lstm, "head": head}


# -----------------------------------------------------------------------------
# Pure-JAX reference (correctness check only)
# -----------------------------------------------------------------------------
def ref_lstm_dir(x_tbd, w_ih, w_hh, b):
    H = w_hh.shape[1]
    B = x_tbd.shape[1]

    def step(carry, x_t):
        h, c = carry
        g = x_t @ w_ih.T + h @ w_hh.T + b
        i = jax.nn.sigmoid(g[:, :H])
        f = jax.nn.sigmoid(g[:, H:2 * H])
        gg = jnp.tanh(g[:, 2 * H:3 * H])
        o = jax.nn.sigmoid(g[:, 3 * H:])
        c = f * c + i * gg
        h = o * jnp.tanh(c)
        return (h, c), h

    init = (jnp.zeros((B, H), jnp.float32), jnp.zeros((B, H), jnp.float32))
    _, hs = lax.scan(step, init, x_tbd)
    return hs


def ref_model(x, raw):
    h = jnp.transpose(x, (1, 0, 2))
    for layer in raw["lstm"]:
        outs = []
        for d, (w_ih, w_hh, b_ih, b_hh) in enumerate(layer):
            inp = h if d == 0 else h[::-1]
            o = ref_lstm_dir(inp, w_ih, w_hh, b_ih + b_hh)
            if d == 1:
                o = o[::-1]
            outs.append(o)
        h = jnp.concatenate(outs, axis=-1)
    out = jnp.transpose(h, (1, 0, 2))
    flat = out.reshape(out.shape[0], -1)
    w1, b1 = raw["fc1"]
    w2, b2 = raw["fc2"]
    return (flat @ w1.T + b1) @ w2.T + b2


# -----------------------------------------------------------------------------
if __name__ == "__main__":
    input_size = 4
    hidden_size = 32
    num_layers = 2
    output_size = 1
    sequence_length = 8
    batch_size = 2

    key = jax.random.PRNGKey(0)
    kx, kp = jax.random.split(key)
    x = jax.random.normal(kx, (batch_size, sequence_length, input_size), jnp.float32)
    raw = init_raw_params(kp, input_size, hidden_size, num_layers,
                          output_size, sequence_length)
    kparams = make_kernel_params(raw, hidden_size, sequence_length)

    fwd = jax.jit(lambda xx: f0_forward(xx, kparams,
                                        hidden_size=hidden_size,
                                        num_layers=num_layers,
                                        output_size=output_size))
    out = jax.block_until_ready(fwd(x))

    ref = jax.block_until_ready(ref_model(x, raw))
    assert out.shape == (batch_size, output_size)
    assert jnp.allclose(out, ref, atol=1e-3, rtol=1e-3), (out, ref)

    print("KERNEL_OK")
</pallas_src>

<mosaic_0001>
module attributes {stable_mosaic.version = 11 : i64} {
  func.func @kernel(%arg0: memref<16x4xf32, #tpu.memory_space<vmem>>, %arg1: memref<4x256xf32, #tpu.memory_space<vmem>>, %arg2: memref<4x256xf32, #tpu.memory_space<vmem>>, %arg3: memref<64x256xf32, #tpu.memory_space<vmem>>, %arg4: memref<1x256xf32, #tpu.memory_space<vmem>>, %arg5: memref<64x256xf32, #tpu.memory_space<vmem>>, %arg6: memref<64x256xf32, #tpu.memory_space<vmem>>, %arg7: memref<64x256xf32, #tpu.memory_space<vmem>>, %arg8: memref<1x256xf32, #tpu.memory_space<vmem>>, %arg9: memref<512x1xf32, #tpu.memory_space<vmem>>, %arg10: memref<1x1xf32, #tpu.memory_space<vmem>>, %arg11: memref<2x1xf32, #tpu.memory_space<vmem>>, %arg12: memref<16x256xf32, #tpu.memory_space<vmem>>, %arg13: memref<16x256xf32, #tpu.memory_space<vmem>>, %arg14: memref<16x64xf32, #tpu.memory_space<vmem>>, %arg15: memref<2x512xf32, #tpu.memory_space<vmem>>) attributes {dimension_semantics = [], scalar_prefetch = 0 : i64, scratch_operands = 4 : i64, tpu.core_type = #tpu.core_type<tc>} {
    %c0 = arith.constant 0 : index
    %c0_0 = arith.constant 0 : index
    %0 = vector.load %arg0[%c0, %c0_0] : memref<16x4xf32, #tpu.memory_space<vmem>>, vector<16x4xf32>
    %c0_1 = arith.constant 0 : index
    %c0_2 = arith.constant 0 : index
    %1 = vector.load %arg1[%c0_1, %c0_2] : memref<4x256xf32, #tpu.memory_space<vmem>>, vector<4x256xf32>
    %cst = arith.constant dense<0.000000e+00> : vector<16x256xf32>
    %2 = tpu.matmul %0, %1, %cst {dimension_numbers = #tpu.dot_dimension_numbers<[1], [0], [0], [1], [0, 0, 1, 1], [], []>} : vector<16x4xf32>, vector<4x256xf32>, vector<16x256xf32> -> vector<16x256xf32>
    %c0_3 = arith.constant 0 : index
    %c0_4 = arith.constant 0 : index
    %3 = vector.load %arg4[%c0_3, %c0_4] : memref<1x256xf32, #tpu.memory_space<vmem>>, vector<1x256xf32>
    %4 = vector.broadcast %3 : vector<1x256xf32> to vector<16x256xf32>
    %5 = arith.addf %2, %4 : vector<16x256xf32>
    %c0_5 = arith.constant 0 : index
    %c0_6 = arith.constant 0 : index
    %6 = vector.load %arg12[%c0_5, %c0_6] : memref<16x256xf32, #tpu.memory_space<vmem>>, vector<16x256xf32>
    tpu.vector_store %arg12[%c0_5, %c0_6], %5 {strides = array<i32>} : memref<16x256xf32, #tpu.memory_space<vmem>>, vector<16x256xf32>,
    %c0_7 = arith.constant 0 : index
    %c0_8 = arith.constant 0 : index
    %7 = vector.load %arg2[%c0_7, %c0_8] : memref<4x256xf32, #tpu.memory_space<vmem>>, vector<4x256xf32>
    %cst_9 = arith.constant dense<0.000000e+00> : vector<16x256xf32>
    %8 = tpu.matmul %0, %7, %cst_9 {dimension_numbers = #tpu.dot_dimension_numbers<[1], [0], [0], [1], [0, 0, 1, 1], [], []>} : vector<16x4xf32>, vector<4x256xf32>, vector<16x256xf32> -> vector<16x256xf32>
    %c0_10 = arith.constant 0 : index
    %c0_11 = arith.constant 0 : index
    %9 = vector.load %arg13[%c0_10, %c0_11] : memref<16x256xf32, #tpu.memory_space<vmem>>, vector<16x256xf32>
    tpu.vector_store %arg13[%c0_10, %c0_11], %8 {strides = array<i32>} : memref<16x256xf32, #tpu.memory_space<vmem>>, vector<16x256xf32>,
    %c0_12 = arith.constant 0 : index
    %c0_13 = arith.constant 0 : index
    %10 = vector.load %arg3[%c0_12, %c0_13] : memref<64x256xf32, #tpu.memory_space<vmem>>, vector<64x256xf32>
    %c0_14 = arith.constant 0 : index
    %c0_15 = arith.constant 0 : index
    %11 = vector.load %arg12[%c0_14, %c0_15] : memref<16x256xf32, #tpu.memory_space<vmem>>, vector<2x256xf32>
    %c14 = arith.constant 14 : index
    %c0_16 = arith.constant 0 : index
    %12 = vector.load %arg13[%c14, %c0_16] : memref<16x256xf32, #tpu.memory_space<vmem>>, vector<2x256xf32>
    %13 = arith.addf %11, %12 : vector<2x256xf32>
    %14 = math.tanh %13 : vector<2x256xf32>
    %15 = vector.extract_strided_slice %14 {offsets = [0, 0], sizes = [2, 64], strides = [1, 1]} : vector<2x256xf32> to vector<2x64xf32>
    %cst_17 = arith.constant 5.000000e-01 : f32
    %16 = vector.broadcast %cst_17 : f32 to vector<2x64xf32>
    %17 = arith.mulf %16, %15 : vector<2x64xf32>
    %cst_18 = arith.constant 5.000000e-01 : f32
    %18 = vector.broadcast %cst_18 : f32 to vector<2x64xf32>
    %19 = arith.addf %17, %18 : vector<2x64xf32>
    %20 = vector.extract_strided_slice %14 {offsets = [0, 128], sizes = [2, 64], strides = [1, 1]} : vector<2x256xf32> to vector<2x64xf32>
    %21 = arith.mulf %19, %20 : vector<2x64xf32>
    %22 = vector.extract_strided_slice %14 {offsets = [0, 192], sizes = [2, 64], strides = [1, 1]} : vector<2x256xf32> to vector<2x64xf32>
    %cst_19 = arith.constant 5.000000e-01 : f32
    %23 = vector.broadcast %cst_19 : f32 to vector<2x64xf32>
    %24 = arith.mulf %23, %22 : vector<2x64xf32>
    %cst_20 = arith.constant 5.000000e-01 : f32
    %25 = vector.broadcast %cst_20 : f32 to vector<2x64xf32>
    %26 = arith.addf %24, %25 : vector<2x64xf32>
    %27 = math.tanh %21 : vector<2x64xf32>
    %28 = arith.mulf %26, %27 : vector<2x64xf32>
    %c0_21 = arith.constant 0 : index
    %c0_22 = arith.constant 0 : index
    %29 = vector.load %arg14[%c0_21, %c0_22] : memref<16x64xf32, #tpu.memory_space<vmem>>, vector<2x64xf32>
    tpu.vector_store %arg14[%c0_21, %c0_22], %28 {strides = array<i32>} : memref<16x64xf32, #tpu.memory_space<vmem>>, vector<2x64xf32>,
    %c2 = arith.constant 2 : index
    %c0_23 = arith.constant 0 : index
    %30 = vector.load %arg12[%c2, %c0_23] : memref<16x256xf32, #tpu.memory_space<vmem>>, vector<2x256xf32>
    %c12 = arith.constant 12 : index
    %c0_24 = arith.constant 0 : index
    %31 = vector.load %arg13[%c12, %c0_24] : memref<16x256xf32, #tpu.memory_space<vmem>>, vector<2x256xf32>
    %32 = arith.addf %30, %31 : vector<2x256xf32>
    %cst_25 = arith.constant dense<0.000000e+00> : vector<2x256xf32>
    %33 = tpu.matmul %28, %10, %cst_25 {dimension_numbers = #tpu.dot_dimension_numbers<[1], [0], [0], [1], [0, 0, 1, 1], [], []>} : vector<2x64xf32>, vector<64x256xf32>, vector<2x256xf32> -> vector<2x256xf32>
    %34 = arith.addf %32, %33 : vector<2x256xf32>
    %35 = math.tanh %34 : vector<2x256xf32>
    %36 = vector.extract_strided_slice %35 {offsets = [0, 0], sizes = [2, 64], strides = [1, 1]} : vector<2x256xf32> to vector<2x64xf32>
    %cst_26 = arith.constant 5.000000e-01 : f32
    %37 = vector.broadcast %cst_26 : f32 to vector<2x64xf32>
    %38 = arith.mulf %37, %36 : vector<2x64xf32>
    %cst_27 = arith.constant 5.000000e-01 : f32
    %39 = vector.broadcast %cst_27 : f32 to vector<2x64xf32>
    %40 = arith.addf %38, %39 : vector<2x64xf32>
    %41 = vector.extract_strided_slice %35 {offsets = [0, 128], sizes = [2, 64], strides = [1, 1]} : vector<2x256xf32> to vector<2x64xf32>
    %42 = arith.mulf %40, %41 : vector<2x64xf32>
    %43 = vector.extract_strided_slice %35 {offsets = [0, 64], sizes = [2, 64], strides = [1, 1]} : vector<2x256xf32> to vector<2x64xf32>
    %cst_28 = arith.constant 5.000000e-01 : f32
    %44 = vector.broadcast %cst_28 : f32 to vector<2x64xf32>
    %45 = arith.mulf %44, %43 : vector<2x64xf32>
    %cst_29 = arith.constant 5.000000e-01 : f32
    %46 = vector.broadcast %cst_29 : f32 to vector<2x64xf32>
    %47 = arith.addf %45, %46 : vector<2x64xf32>
    %48 = arith.mulf %47, %21 : vector<2x64xf32>
    %49 = arith.addf %48, %42 : vector<2x64xf32>
    %50 = vector.extract_strided_slice %35 {offsets = [0, 192], sizes = [2, 64], strides = [1, 1]} : vector<2x256xf32> to vector<2x64xf32>
    %cst_30 = arith.constant 5.000000e-01 : f32
    %51 = vector.broadcast %cst_30 : f32 to vector<2x64xf32>
    %52 = arith.mulf %51, %50 : vector<2x64xf32>
    %cst_31 = arith.constant 5.000000e-01 : f32
    %53 = vector.broadcast %cst_31 : f32 to vector<2x64xf32>
    %54 = arith.addf %52, %53 : vector<2x64xf32>
    %55 = math.tanh %49 : vector<2x64xf32>
    %56 = arith.mulf %54, %55 : vector<2x64xf32>
    %c2_32 = arith.constant 2 : index
    %c0_33 = arith.constant 0 : index
    %57 = vector.load %arg14[%c2_32, %c0_33] : memref<16x64xf32, #tpu.memory_space<vmem>>, vector<2x64xf32>
    tpu.vector_store %arg14[%c2_32, %c0_33], %56 {strides = array<i32>} : memref<16x64xf32, #tpu.memory_space<vmem>>, vector<2x64xf32>,
    %c4 = arith.constant 4 : index
    %c0_34 = arith.constant 0 : index
    %58 = vector.load %arg12[%c4, %c0_34] : memref<16x256xf32, #tpu.memory_space<vmem>>, vector<2x256xf32>
    %c10 = arith.constant 10 : index
    %c0_35 = arith.constant 0 : index
    %59 = vector.load %arg13[%c10, %c0_35] : memref<16x256xf32, #tpu.memory_space<vmem>>, vector<2x256xf32>
    %60 = arith.addf %58, %59 : vector<2x256xf32>
    %cst_36 = arith.constant dense<0.000000e+00> : vector<2x256xf32>
    %61 = tpu.matmul %56, %10, %cst_36 {dimension_numbers = #tpu.dot_dimension_numbers<[1], [0], [0], [1], [0, 0, 1, 1], [], []>} : vector<2x64xf32>, vector<64x256xf32>, vector<2x256xf32> -> vector<2x256xf32>
    %62 = arith.addf %60, %61 : vector<2x256xf32>
    %63 = math.tanh %62 : vector<2x256xf32>
    %64 = vector.extract_strided_slice %63 {offsets = [0, 0], sizes = [2, 64], strides = [1, 1]} : vector<2x256xf32> to vector<2x64xf32>
    %cst_37 = arith.constant 5.000000e-01 : f32
    %65 = vector.broadcast %cst_37 : f32 to vector<2x64xf32>
    %66 = arith.mulf %65, %64 : vector<2x64xf32>
    %cst_38 = arith.constant 5.000000e-01 : f32
    %67 = vector.broadcast %cst_38 : f32 to vector<2x64xf32>
    %68 = arith.addf %66, %67 : vector<2x64xf32>
    %69 = vector.extract_strided_slice %63 {offsets = [0, 128], sizes = [2, 64], strides = [1, 1]} : vector<2x256xf32> to vector<2x64xf32>
    %70 = arith.mulf %68, %69 : vector<2x64xf32>
    %71 = vector.extract_strided_slice %63 {offsets = [0, 64], sizes = [2, 64], strides = [1, 1]} : vector<2x256xf32> to vector<2x64xf32>
    %cst_39 = arith.constant 5.000000e-01 : f32
    %72 = vector.broadcast %cst_39 : f32 to vector<2x64xf32>
    %73 = arith.mulf %72, %71 : vector<2x64xf32>
    %cst_40 = arith.constant 5.000000e-01 : f32
    %74 = vector.broadcast %cst_40 : f32 to vector<2x64xf32>
    %75 = arith.addf %73, %74 : vector<2x64xf32>
    %76 = arith.mulf %75, %49 : vector<2x64xf32>
    %77 = arith.addf %76, %70 : vector<2x64xf32>
    %78 = vector.extract_strided_slice %63 {offsets = [0, 192], sizes = [2, 64], strides = [1, 1]} : vector<2x256xf32> to vector<2x64xf32>
    %cst_41 = arith.constant 5.000000e-01 : f32
    %79 = vector.broadcast %cst_41 : f32 to vector<2x64xf32>
    %80 = arith.mulf %79, %78 : vector<2x64xf32>
    %cst_42 = arith.constant 5.000000e-01 : f32
    %81 = vector.broadcast %cst_42 : f32 to vector<2x64xf32>
    %82 = arith.addf %80, %81 : vector<2x64xf32>
    %83 = math.tanh %77 : vector<2x64xf32>
    %84 = arith.mulf %82, %83 : vector<2x64xf32>
    %c4_43 = arith.constant 4 : index
    %c0_44 = arith.constant 0 : index
    %85 = vector.load %arg14[%c4_43, %c0_44] : memref<16x64xf32, #tpu.memory_space<vmem>>, vector<2x64xf32>
    tpu.vector_store %arg14[%c4_43, %c0_44], %84 {strides = array<i32>} : memref<16x64xf32, #tpu.memory_space<vmem>>, vector<2x64xf32>,
    %c6 = arith.constant 6 : index
    %c0_45 = arith.constant 0 : index
    %86 = vector.load %arg12[%c6, %c0_45] : memref<16x256xf32, #tpu.memory_space<vmem>>, vector<2x256xf32>
    %c8 = arith.constant 8 : index
    %c0_46 = arith.constant 0 : index
    %87 = vector.load %arg13[%c8, %c0_46] : memref<16x256xf32, #tpu.memory_space<vmem>>, vector<2x256xf32>
    %88 = arith.addf %86, %87 : vector<2x256xf32>
    %cst_47 = arith.constant dense<0.000000e+00> : vector<2x256xf32>
    %89 = tpu.matmul %84, %10, %cst_47 {dimension_numbers = #tpu.dot_dimension_numbers<[1], [0], [0], [1], [0, 0, 1, 1], [], []>} : vector<2x64xf32>, vector<64x256xf32>, vector<2x256xf32> -> vector<2x256xf32>
    %90 = arith.addf %88, %89 : vector<2x256xf32>
    %91 = math.tanh %90 : vector<2x256xf32>
    %92 = vector.extract_strided_slice %91 {offsets = [0, 0], sizes = [2, 64], strides = [1, 1]} : vector<2x256xf32> to vector<2x64xf32>
    %cst_48 = arith.constant 5.000000e-01 : f32
    %93 = vector.broadcast %cst_48 : f32 to vector<2x64xf32>
    %94 = arith.mulf %93, %92 : vector<2x64xf32>
    %cst_49 = arith.constant 5.000000e-01 : f32
    %95 = vector.broadcast %cst_49 : f32 to vector<2x64xf32>
    %96 = arith.addf %94, %95 : vector<2x64xf32>
    %97 = vector.extract_strided_slice %91 {offsets = [0, 128], sizes = [2, 64], strides = [1, 1]} : vector<2x256xf32> to vector<2x64xf32>
    %98 = arith.mulf %96, %97 : vector<2x64xf32>
    %99 = vector.extract_strided_slice %91 {offsets = [0, 64], sizes = [2, 64], strides = [1, 1]} : vector<2x256xf32> to vector<2x64xf32>
    %cst_50 = arith.constant 5.000000e-01 : f32
    %100 = vector.broadcast %cst_50 : f32 to vector<2x64xf32>
    %101 = arith.mulf %100, %99 : vector<2x64xf32>
    %cst_51 = arith.constant 5.000000e-01 : f32
    %102 = vector.broadcast %cst_51 : f32 to vector<2x64xf32>
    %103 = arith.addf %101, %102 : vector<2x64xf32>
    %104 = arith.mulf %103, %77 : vector<2x64xf32>
    %105 = arith.addf %104, %98 : vector<2x64xf32>
    %106 = vector.extract_strided_slice %91 {offsets = [0, 192], sizes = [2, 64], strides = [1, 1]} : vector<2x256xf32> to vector<2x64xf32>
    %cst_52 = arith.constant 5.000000e-01 : f32
    %107 = vector.broadcast %cst_52 : f32 to vector<2x64xf32>
    %108 = arith.mulf %107, %106 : vector<2x64xf32>
    %cst_53 = arith.constant 5.000000e-01 : f32
    %109 = vector.broadcast %cst_53 : f32 to vector<2x64xf32>
    %110 = arith.addf %108, %109 : vector<2x64xf32>
    %111 = math.tanh %105 : vector<2x64xf32>
    %112 = arith.mulf %110, %111 : vector<2x64xf32>
    %c6_54 = arith.constant 6 : index
    %c0_55 = arith.constant 0 : index
    %113 = vector.load %arg14[%c6_54, %c0_55] : memref<16x64xf32, #tpu.memory_space<vmem>>, vector<2x64xf32>
    tpu.vector_store %arg14[%c6_54, %c0_55], %112 {strides = array<i32>} : memref<16x64xf32, #tpu.memory_space<vmem>>, vector<2x64xf32>,
    %c8_56 = arith.constant 8 : index
    %c0_57 = arith.constant 0 : index
    %114 = vector.load %arg12[%c8_56, %c0_57] : memref<16x256xf32, #tpu.memory_space<vmem>>, vector<2x256xf32>
    %c6_58 = arith.constant 6 : index
    %c0_59 = arith.constant 0 : index
    %115 = vector.load %arg13[%c6_58, %c0_59] : memref<16x256xf32, #tpu.memory_space<vmem>>, vector<2x256xf32>
    %116 = arith.addf %114, %115 : vector<2x256xf32>
    %cst_60 = arith.constant dense<0.000000e+00> : vector<2x256xf32>
    %117 = tpu.matmul %112, %10, %cst_60 {dimension_numbers = #tpu.dot_dimension_numbers<[1], [0], [0], [1], [0, 0, 1, 1], [], []>} : vector<2x64xf32>, vector<64x256xf32>, vector<2x256xf32> -> vector<2x256xf32>
    %118 = arith.addf %116, %117 : vector<2x256xf32>
    %119 = math.tanh %118 : vector<2x256xf32>
    %120 = vector.extract_strided_slice %119 {offsets = [0, 0], sizes = [2, 64], strides = [1, 1]} : vector<2x256xf32> to vector<2x64xf32>
    %cst_61 = arith.constant 5.000000e-01 : f32
    %121 = vector.broadcast %cst_61 : f32 to vector<2x64xf32>
    %122 = arith.mulf %121, %120 : vector<2x64xf32>
    %cst_62 = arith.constant 5.000000e-01 : f32
    %123 = vector.broadcast %cst_62 : f32 to vector<2x64xf32>
    %124 = arith.addf %122, %123 : vector<2x64xf32>
    %125 = vector.extract_strided_slice %119 {offsets = [0, 128], sizes = [2, 64], strides = [1, 1]} : vector<2x256xf32> to vector<2x64xf32>
    %126 = arith.mulf %124, %125 : vector<2x64xf32>
    %127 = vector.extract_strided_slice %119 {offsets = [0, 64], sizes = [2, 64], strides = [1, 1]} : vector<2x256xf32> to vector<2x64xf32>
    %cst_63 = arith.constant 5.000000e-01 : f32
    %128 = vector.broadcast %cst_63 : f32 to vector<2x64xf32>
    %129 = arith.mulf %128, %127 : vector<2x64xf32>
    %cst_64 = arith.constant 5.000000e-01 : f32
    %130 = vector.broadcast %cst_64 : f32 to vector<2x64xf32>
    %131 = arith.addf %129, %130 : vector<2x64xf32>
    %132 = arith.mulf %131, %105 : vector<2x64xf32>
    %133 = arith.addf %132, %126 : vector<2x64xf32>
    %134 = vector.extract_strided_slice %119 {offsets = [0, 192], sizes = [2, 64], strides = [1, 1]} : vector<2x256xf32> to vector<2x64xf32>
    %cst_65 = arith.constant 5.000000e-01 : f32
    %135 = vector.broadcast %cst_65 : f32 to vector<2x64xf32>
    %136 = arith.mulf %135, %134 : vector<2x64xf32>
    %cst_66 = arith.constant 5.000000e-01 : f32
    %137 = vector.broadcast %cst_66 : f32 to vector<2x64xf32>
    %138 = arith.addf %136, %137 : vector<2x64xf32>
    %139 = math.tanh %133 : vector<2x64xf32>
    %140 = arith.mulf %138, %139 : vector<2x64xf32>
    %c8_67 = arith.constant 8 : index
    %c0_68 = arith.constant 0 : index
    %141 = vector.load %arg14[%c8_67, %c0_68] : memref<16x64xf32, #tpu.memory_space<vmem>>, vector<2x64xf32>
    tpu.vector_store %arg14[%c8_67, %c0_68], %140 {strides = array<i32>} : memref<16x64xf32, #tpu.memory_space<vmem>>, vector<2x64xf32>,
    %c10_69 = arith.constant 10 : index
    %c0_70 = arith.constant 0 : index
    %142 = vector.load %arg12[%c10_69, %c0_70] : memref<16x256xf32, #tpu.memory_space<vmem>>, vector<2x256xf32>
    %c4_71 = arith.constant 4 : index
    %c0_72 = arith.constant 0 : index
    %143 = vector.load %arg13[%c4_71, %c0_72] : memref<16x256xf32, #tpu.memory_space<vmem>>, vector<2x256xf32>
    %144 = arith.addf %142, %143 : vector<2x256xf32>
    %cst_73 = arith.constant dense<0.000000e+00> : vector<2x256xf32>
    %145 = tpu.matmul %140, %10, %cst_73 {dimension_numbers = #tpu.dot_dimension_numbers<[1], [0], [0], [1], [0, 0, 1, 1], [], []>} : vector<2x64xf32>, vector<64x256xf32>, vector<2x256xf32> -> vector<2x256xf32>
    %146 = arith.addf %144, %145 : vector<2x256xf32>
    %147 = math.tanh %146 : vector<2x256xf32>
    %148 = vector.extract_strided_slice %147 {offsets = [0, 0], sizes = [2, 64], strides = [1, 1]} : vector<2x256xf32> to vector<2x64xf32>
    %cst_74 = arith.constant 5.000000e-01 : f32
    %149 = vector.broadcast %cst_74 : f32 to vector<2x64xf32>
    %150 = arith.mulf %149, %148 : vector<2x64xf32>
    %cst_75 = arith.constant 5.000000e-01 : f32
    %151 = vector.broadcast %cst_75 : f32 to vector<2x64xf32>
    %152 = arith.addf %150, %151 : vector<2x64xf32>
    %153 = vector.extract_strided_slice %147 {offsets = [0, 128], sizes = [2, 64], strides = [1, 1]} : vector<2x256xf32> to vector<2x64xf32>
    %154 = arith.mulf %152, %153 : vector<2x64xf32>
    %155 = vector.extract_strided_slice %147 {offsets = [0, 64], sizes = [2, 64], strides = [1, 1]} : vector<2x256xf32> to vector<2x64xf32>
    %cst_76 = arith.constant 5.000000e-01 : f32
    %156 = vector.broadcast %cst_76 : f32 to vector<2x64xf32>
    %157 = arith.mulf %156, %155 : vector<2x64xf32>
    %cst_77 = arith.constant 5.000000e-01 : f32
    %158 = vector.broadcast %cst_77 : f32 to vector<2x64xf32>
    %159 = arith.addf %157, %158 : vector<2x64xf32>
    %160 = arith.mulf %159, %133 : vector<2x64xf32>
    %161 = arith.addf %160, %154 : vector<2x64xf32>
    %162 = vector.extract_strided_slice %147 {offsets = [0, 192], sizes = [2, 64], strides = [1, 1]} : vector<2x256xf32> to vector<2x64xf32>
    %cst_78 = arith.constant 5.000000e-01 : f32
    %163 = vector.broadcast %cst_78 : f32 to vector<2x64xf32>
    %164 = arith.mulf %163, %162 : vector<2x64xf32>
    %cst_79 = arith.constant 5.000000e-01 : f32
    %165 = vector.broadcast %cst_79 : f32 to vector<2x64xf32>
    %166 = arith.addf %164, %165 : vector<2x64xf32>
    %167 = math.tanh %161 : vector<2x64xf32>
    %168 = arith.mulf %166, %167 : vector<2x64xf32>
    %c10_80 = arith.constant 10 : index
    %c0_81 = arith.constant 0 : index
    %169 = vector.load %arg14[%c10_80, %c0_81] : memref<16x64xf32, #tpu.memory_space<vmem>>, vector<2x64xf32>
    tpu.vector_store %arg14[%c10_80, %c0_81], %168 {strides = array<i32>} : memref<16x64xf32, #tpu.memory_space<vmem>>, vector<2x64xf32>,
    %c12_82 = arith.constant 12 : index
    %c0_83 = arith.constant 0 : index
    %170 = vector.load %arg12[%c12_82, %c0_83] : memref<16x256xf32, #tpu.memory_space<vmem>>, vector<2x256xf32>
    %c2_84 = arith.constant 2 : index
    %c0_85 = arith.constant 0 : index
    %171 = vector.load %arg13[%c2_84, %c0_85] : memref<16x256xf32, #tpu.memory_space<vmem>>, vector<2x256xf32>
    %172 = arith.addf %170, %171 : vector<2x256xf32>
    %cst_86 = arith.constant dense<0.000000e+00> : vector<2x256xf32>
    %173 = tpu.matmul %168, %10, %cst_86 {dimension_numbers = #tpu.dot_dimension_numbers<[1], [0], [0], [1], [0, 0, 1, 1], [], []>} : vector<2x64xf32>, vector<64x256xf32>, vector<2x256xf32> -> vector<2x256xf32>
    %174 = arith.addf %172, %173 : vector<2x256xf32>
    %175 = math.tanh %174 : vector<2x256xf32>
    %176 = vector.extract_strided_slice %175 {offsets = [0, 0], sizes = [2, 64], strides = [1, 1]} : vector<2x256xf32> to vector<2x64xf32>
    %cst_87 = arith.constant 5.000000e-01 : f32
    %177 = vector.broadcast %cst_87 : f32 to vector<2x64xf32>
    %178 = arith.mulf %177, %176 : vector<2x64xf32>
    %cst_88 = arith.constant 5.000000e-01 : f32
    %179 = vector.broadcast %cst_88 : f32 to vector<2x64xf32>
    %180 = arith.addf %178, %179 : vector<2x64xf32>
    %181 = vector.extract_strided_slice %175 {offsets = [0, 128], sizes = [2, 64], strides = [1, 1]} : vector<2x256xf32> to vector<2x64xf32>
    %182 = arith.mulf %180, %181 : vector<2x64xf32>
    %183 = vector.extract_strided_slice %175 {offsets = [0, 64], sizes = [2, 64], strides = [1, 1]} : vector<2x256xf32> to vector<2x64xf32>
    %cst_89 = arith.constant 5.000000e-01 : f32
    %184 = vector.broadcast %cst_89 : f32 to vector<2x64xf32>
    %185 = arith.mulf %184, %183 : vector<2x64xf32>
    %cst_90 = arith.constant 5.000000e-01 : f32
    %186 = vector.broadcast %cst_90 : f32 to vector<2x64xf32>
    %187 = arith.addf %185, %186 : vector<2x64xf32>
    %188 = arith.mulf %187, %161 : vector<2x64xf32>
    %189 = arith.addf %188, %182 : vector<2x64xf32>
    %190 = vector.extract_strided_slice %175 {offsets = [0, 192], sizes = [2, 64], strides = [1, 1]} : vector<2x256xf32> to vector<2x64xf32>
    %cst_91 = arith.constant 5.000000e-01 : f32
    %191 = vector.broadcast %cst_91 : f32 to vector<2x64xf32>
    %192 = arith.mulf %191, %190 : vector<2x64xf32>
    %cst_92 = arith.constant 5.000000e-01 : f32
    %193 = vector.broadcast %cst_92 : f32 to vector<2x64xf32>
    %194 = arith.addf %192, %193 : vector<2x64xf32>
    %195 = math.tanh %189 : vector<2x64xf32>
    %196 = arith.mulf %194, %195 : vector<2x64xf32>
    %c12_93 = arith.constant 12 : index
    %c0_94 = arith.constant 0 : index
    %197 = vector.load %arg14[%c12_93, %c0_94] : memref<16x64xf32, #tpu.memory_space<vmem>>, vector<2x64xf32>
    tpu.vector_store %arg14[%c12_93, %c0_94], %196 {strides = array<i32>} : memref<16x64xf32, #tpu.memory_space<vmem>>, vector<2x64xf32>,
    %c14_95 = arith.constant 14 : index
    %c0_96 = arith.constant 0 : index
    %198 = vector.load %arg12[%c14_95, %c0_96] : memref<16x256xf32, #tpu.memory_space<vmem>>, vector<2x256xf32>
    %c0_97 = arith.constant 0 : index
    %c0_98 = arith.constant 0 : index
    %199 = vector.load %arg13[%c0_97, %c0_98] : memref<16x256xf32, #tpu.memory_space<vmem>>, vector<2x256xf32>
    %200 = arith.addf %198, %199 : vector<2x256xf32>
    %cst_99 = arith.constant dense<0.000000e+00> : vector<2x256xf32>
    %201 = tpu.matmul %196, %10, %cst_99 {dimension_numbers = #tpu.dot_dimension_numbers<[1], [0], [0], [1], [0, 0, 1, 1], [], []>} : vector<2x64xf32>, vector<64x256xf32>, vector<2x256xf32> -> vector<2x256xf32>
    %202 = arith.addf %200, %201 : vector<2x256xf32>
    %203 = math.tanh %202 : vector<2x256xf32>
    %204 = vector.extract_strided_slice %203 {offsets = [0, 0], sizes = [2, 64], strides = [1, 1]} : vector<2x256xf32> to vector<2x64xf32>
    %cst_100 = arith.constant 5.000000e-01 : f32
    %205 = vector.broadcast %cst_100 : f32 to vector<2x64xf32>
    %206 = arith.mulf %205, %204 : vector<2x64xf32>
    %cst_101 = arith.constant 5.000000e-01 : f32
    %207 = vector.broadcast %cst_101 : f32 to vector<2x64xf32>
    %208 = arith.addf %206, %207 : vector<2x64xf32>
    %209 = vector.extract_strided_slice %203 {offsets = [0, 128], sizes = [2, 64], strides = [1, 1]} : vector<2x256xf32> to vector<2x64xf32>
    %210 = arith.mulf %208, %209 : vector<2x64xf32>
    %211 = vector.extract_strided_slice %203 {offsets = [0, 64], sizes = [2, 64], strides = [1, 1]} : vector<2x256xf32> to vector<2x64xf32>
    %cst_102 = arith.constant 5.000000e-01 : f32
    %212 = vector.broadcast %cst_102 : f32 to vector<2x64xf32>
    %213 = arith.mulf %212, %211 : vector<2x64xf32>
    %cst_103 = arith.constant 5.000000e-01 : f32
    %214 = vector.broadcast %cst_103 : f32 to vector<2x64xf32>
    %215 = arith.addf %213, %214 : vector<2x64xf32>
    %216 = arith.mulf %215, %189 : vector<2x64xf32>
    %217 = arith.addf %216, %210 : vector<2x64xf32>
    %218 = vector.extract_strided_slice %203 {offsets = [0, 192], sizes = [2, 64], strides = [1, 1]} : vector<2x256xf32> to vector<2x64xf32>
    %cst_104 = arith.constant 5.000000e-01 : f32
    %219 = vector.broadcast %cst_104 : f32 to vector<2x64xf32>
    %220 = arith.mulf %219, %218 : vector<2x64xf32>
    %cst_105 = arith.constant 5.000000e-01 : f32
    %221 = vector.broadcast %cst_105 : f32 to vector<2x64xf32>
    %222 = arith.addf %220, %221 : vector<2x64xf32>
    %223 = math.tanh %217 : vector<2x64xf32>
    %224 = arith.mulf %222, %223 : vector<2x64xf32>
    %c14_106 = arith.constant 14 : index
    %c0_107 = arith.constant 0 : index
    %225 = vector.load %arg14[%c14_106, %c0_107] : memref<16x64xf32, #tpu.memory_space<vmem>>, vector<2x64xf32>
    tpu.vector_store %arg14[%c14_106, %c0_107], %224 {strides = array<i32>} : memref<16x64xf32, #tpu.memory_space<vmem>>, vector<2x64xf32>,
    %c0_108 = arith.constant 0 : index
    %c0_109 = arith.constant 0 : index
    %226 = vector.load %arg14[%c0_108, %c0_109] : memref<16x64xf32, #tpu.memory_space<vmem>>, vector<16x64xf32>
    %c0_110 = arith.constant 0 : index
    %c0_111 = arith.constant 0 : index
    %227 = vector.load %arg5[%c0_110, %c0_111] : memref<64x256xf32, #tpu.memory_space<vmem>>, vector<64x256xf32>
    %cst_112 = arith.constant dense<0.000000e+00> : vector<16x256xf32>
    %228 = tpu.matmul %226, %227, %cst_112 {dimension_numbers = #tpu.dot_dimension_numbers<[1], [0], [0], [1], [0, 0, 1, 1], [], []>} : vector<16x64xf32>, vector<64x256xf32>, vector<16x256xf32> -> vector<16x256xf32>
    %c0_113 = arith.constant 0 : index
    %c0_114 = arith.constant 0 : index
    %229 = vector.load %arg8[%c0_113, %c0_114] : memref<1x256xf32, #tpu.memory_space<vmem>>, vector<1x256xf32>
    %230 = vector.broadcast %229 : vector<1x256xf32> to vector<16x256xf32>
    %231 = arith.addf %228, %230 : vector<16x256xf32>
    %c0_115 = arith.constant 0 : index
    %c0_116 = arith.constant 0 : index
    %232 = vector.load %arg12[%c0_115, %c0_116] : memref<16x256xf32, #tpu.memory_space<vmem>>, vector<16x256xf32>
    tpu.vector_store %arg12[%c0_115, %c0_116], %231 {strides = array<i32>} : memref<16x256xf32, #tpu.memory_space<vmem>>, vector<16x256xf32>,
    %c0_117 = arith.constant 0 : index
    %c0_118 = arith.constant 0 : index
    %233 = vector.load %arg6[%c0_117, %c0_118] : memref<64x256xf32, #tpu.memory_space<vmem>>, vector<64x256xf32>
    %cst_119 = arith.constant dense<0.000000e+00> : vector<16x256xf32>
    %234 = tpu.matmul %226, %233, %cst_119 {dimension_numbers = #tpu.dot_dimension_numbers<[1], [0], [0], [1], [0, 0, 1, 1], [], []>} : vector<16x64xf32>, vector<64x256xf32>, vector<16x256xf32> -> vector<16x256xf32>
    %c0_120 = arith.constant 0 : index
    %c0_121 = arith.constant 0 : index
    %235 = vector.load %arg13[%c0_120, %c0_121] : memref<16x256xf32, #tpu.memory_space<vmem>>, vector<16x256xf32>
    tpu.vector_store %arg13[%c0_120, %c0_121], %234 {strides = array<i32>} : memref<16x256xf32, #tpu.memory_space<vmem>>, vector<16x256xf32>,
    %c0_122 = arith.constant 0 : index
    %c0_123 = arith.constant 0 : index
    %236 = vector.load %arg7[%c0_122, %c0_123] : memref<64x256xf32, #tpu.memory_space<vmem>>, vector<64x256xf32>
    %c0_124 = arith.constant 0 : index
    %c0_125 = arith.constant 0 : index
    %237 = vector.load %arg12[%c0_124, %c0_125] : memref<16x256xf32, #tpu.memory_space<vmem>>, vector<2x256xf32>
    %c14_126 = arith.constant 14 : index
    %c0_127 = arith.constant 0 : index
    %238 = vector.load %arg13[%c14_126, %c0_127] : memref<16x256xf32, #tpu.memory_space<vmem>>, vector<2x256xf32>
    %239 = arith.addf %237, %238 : vector<2x256xf32>
    %240 = math.tanh %239 : vector<2x256xf32>
    %241 = vector.extract_strided_slice %240 {offsets = [0, 0], sizes = [2, 64], strides = [1, 1]} : vector<2x256xf32> to vector<2x64xf32>
    %cst_128 = arith.constant 5.000000e-01 : f32
    %242 = vector.broadcast %cst_128 : f32 to vector<2x64xf32>
    %243 = arith.mulf %242, %241 : vector<2x64xf32>
    %cst_129 = arith.constant 5.000000e-01 : f32
    %244 = vector.broadcast %cst_129 : f32 to vector<2x64xf32>
    %245 = arith.addf %243, %244 : vector<2x64xf32>
    %246 = vector.extract_strided_slice %240 {offsets = [0, 128], sizes = [2, 64], strides = [1, 1]} : vector<2x256xf32> to vector<2x64xf32>
    %247 = arith.mulf %245, %246 : vector<2x64xf32>
    %248 = vector.extract_strided_slice %240 {offsets = [0, 192], sizes = [2, 64], strides = [1, 1]} : vector<2x256xf32> to vector<2x64xf32>
    %cst_130 = arith.constant 5.000000e-01 : f32
    %249 = vector.broadcast %cst_130 : f32 to vector<2x64xf32>
    %250 = arith.mulf %249, %248 : vector<2x64xf32>
    %cst_131 = arith.constant 5.000000e-01 : f32
    %251 = vector.broadcast %cst_131 : f32 to vector<2x64xf32>
    %252 = arith.addf %250, %251 : vector<2x64xf32>
    %253 = math.tanh %247 : vector<2x64xf32>
    %254 = arith.mulf %252, %253 : vector<2x64xf32>
    %c0_132 = arith.constant 0 : index
    %c0_133 = arith.constant 0 : index
    %255 = vector.load %arg15[%c0_132, %c0_133] : memref<2x512xf32, #tpu.memory_space<vmem>>, vector<2x64xf32>
    tpu.vector_store %arg15[%c0_132, %c0_133], %254 {strides = array<i32>} : memref<2x512xf32, #tpu.memory_space<vmem>>, vector<2x64xf32>,
    %c2_134 = arith.constant 2 : index
    %c0_135 = arith.constant 0 : index
    %256 = vector.load %arg12[%c2_134, %c0_135] : memref<16x256xf32, #tpu.memory_space<vmem>>, vector<2x256xf32>
    %c12_136 = arith.constant 12 : index
    %c0_137 = arith.constant 0 : index
    %257 = vector.load %arg13[%c12_136, %c0_137] : memref<16x256xf32, #tpu.memory_space<vmem>>, vector<2x256xf32>
    %258 = arith.addf %256, %257 : vector<2x256xf32>
    %cst_138 = arith.constant dense<0.000000e+00> : vector<2x256xf32>
    %259 = tpu.matmul %254, %236, %cst_138 {dimension_numbers = #tpu.dot_dimension_numbers<[1], [0], [0], [1], [0, 0, 1, 1], [], []>} : vector<2x64xf32>, vector<64x256xf32>, vector<2x256xf32> -> vector<2x256xf32>
    %260 = arith.addf %258, %259 : vector<2x256xf32>
    %261 = math.tanh %260 : vector<2x256xf32>
    %262 = vector.extract_strided_slice %261 {offsets = [0, 0], sizes = [2, 64], strides = [1, 1]} : vector<2x256xf32> to vector<2x64xf32>
    %cst_139 = arith.constant 5.000000e-01 : f32
    %263 = vector.broadcast %cst_139 : f32 to vector<2x64xf32>
    %264 = arith.mulf %263, %262 : vector<2x64xf32>
    %cst_140 = arith.constant 5.000000e-01 : f32
    %265 = vector.broadcast %cst_140 : f32 to vector<2x64xf32>
    %266 = arith.addf %264, %265 : vector<2x64xf32>
    %267 = vector.extract_strided_slice %261 {offsets = [0, 128], sizes = [2, 64], strides = [1, 1]} : vector<2x256xf32> to vector<2x64xf32>
    %268 = arith.mulf %266, %267 : vector<2x64xf32>
    %269 = vector.extract_strided_slice %261 {offsets = [0, 64], sizes = [2, 64], strides = [1, 1]} : vector<2x256xf32> to vector<2x64xf32>
    %cst_141 = arith.constant 5.000000e-01 : f32
    %270 = vector.broadcast %cst_141 : f32 to vector<2x64xf32>
    %271 = arith.mulf %270, %269 : vector<2x64xf32>
    %cst_142 = arith.constant 5.000000e-01 : f32
    %272 = vector.broadcast %cst_142 : f32 to vector<2x64xf32>
    %273 = arith.addf %271, %272 : vector<2x64xf32>
    %274 = arith.mulf %273, %247 : vector<2x64xf32>
    %275 = arith.addf %274, %268 : vector<2x64xf32>
    %276 = vector.extract_strided_slice %261 {offsets = [0, 192], sizes = [2, 64], strides = [1, 1]} : vector<2x256xf32> to vector<2x64xf32>
    %cst_143 = arith.constant 5.000000e-01 : f32
    %277 = vector.broadcast %cst_143 : f32 to vector<2x64xf32>
    %278 = arith.mulf %277, %276 : vector<2x64xf32>
    %cst_144 = arith.constant 5.000000e-01 : f32
    %279 = vector.broadcast %cst_144 : f32 to vector<2x64xf32>
    %280 = arith.addf %278, %279 : vector<2x64xf32>
    %281 = math.tanh %275 : vector<2x64xf32>
    %282 = arith.mulf %280, %281 : vector<2x64xf32>
    %c0_145 = arith.constant 0 : index
    %c64 = arith.constant 64 : index
    %283 = vector.load %arg15[%c0_145, %c64] : memref<2x512xf32, #tpu.memory_space<vmem>>, vector<2x64xf32>
    tpu.vector_store %arg15[%c0_145, %c64], %282 {strides = array<i32>} : memref<2x512xf32, #tpu.memory_space<vmem>>, vector<2x64xf32>,
    %c4_146 = arith.constant 4 : index
    %c0_147 = arith.constant 0 : index
    %284 = vector.load %arg12[%c4_146, %c0_147] : memref<16x256xf32, #tpu.memory_space<vmem>>, vector<2x256xf32>
    %c10_148 = arith.constant 10 : index
    %c0_149 = arith.constant 0 : index
    %285 = vector.load %arg13[%c10_148, %c0_149] : memref<16x256xf32, #tpu.memory_space<vmem>>, vector<2x256xf32>
    %286 = arith.addf %284, %285 : vector<2x256xf32>
    %cst_150 = arith.constant dense<0.000000e+00> : vector<2x256xf32>
    %287 = tpu.matmul %282, %236, %cst_150 {dimension_numbers = #tpu.dot_dimension_numbers<[1], [0], [0], [1], [0, 0, 1, 1], [], []>} : vector<2x64xf32>, vector<64x256xf32>, vector<2x256xf32> -> vector<2x256xf32>
    %288 = arith.addf %286, %287 : vector<2x256xf32>
    %289 = math.tanh %288 : vector<2x256xf32>
    %290 = vector.extract_strided_slice %289 {offsets = [0, 0], sizes = [2, 64], strides = [1, 1]} : vector<2x256xf32> to vector<2x64xf32>
    %cst_151 = arith.constant 5.000000e-01 : f32
    %291 = vector.broadcast %cst_151 : f32 to vector<2x64xf32>
    %292 = arith.mulf %291, %290 : vector<2x64xf32>
    %cst_152 = arith.constant 5.000000e-01 : f32
    %293 = vector.broadcast %cst_152 : f32 to vector<2x64xf32>
    %294 = arith.addf %292, %293 : vector<2x64xf32>
    %295 = vector.extract_strided_slice %289 {offsets = [0, 128], sizes = [2, 64], strides = [1, 1]} : vector<2x256xf32> to vector<2x64xf32>
    %296 = arith.mulf %294, %295 : vector<2x64xf32>
    %297 = vector.extract_strided_slice %289 {offsets = [0, 64], sizes = [2, 64], strides = [1, 1]} : vector<2x256xf32> to vector<2x64xf32>
    %cst_153 = arith.constant 5.000000e-01 : f32
    %298 = vector.broadcast %cst_153 : f32 to vector<2x64xf32>
    %299 = arith.mulf %298, %297 : vector<2x64xf32>
    %cst_154 = arith.constant 5.000000e-01 : f32
    %300 = vector.broadcast %cst_154 : f32 to vector<2x64xf32>
    %301 = arith.addf %299, %300 : vector<2x64xf32>
    %302 = arith.mulf %301, %275 : vector<2x64xf32>
    %303 = arith.addf %302, %296 : vector<2x64xf32>
    %304 = vector.extract_strided_slice %289 {offsets = [0, 192], sizes = [2, 64], strides = [1, 1]} : vector<2x256xf32> to vector<2x64xf32>
    %cst_155 = arith.constant 5.000000e-01 : f32
    %305 = vector.broadcast %cst_155 : f32 to vector<2x64xf32>
    %306 = arith.mulf %305, %304 : vector<2x64xf32>
    %cst_156 = arith.constant 5.000000e-01 : f32
    %307 = vector.broadcast %cst_156 : f32 to vector<2x64xf32>
    %308 = arith.addf %306, %307 : vector<2x64xf32>
    %309 = math.tanh %303 : vector<2x64xf32>
    %310 = arith.mulf %308, %309 : vector<2x64xf32>
    %c0_157 = arith.constant 0 : index
    %c128 = arith.constant 128 : index
    %311 = vector.load %arg15[%c0_157, %c128] : memref<2x512xf32, #tpu.memory_space<vmem>>, vector<2x64xf32>
    tpu.vector_store %arg15[%c0_157, %c128], %310 {strides = array<i32>} : memref<2x512xf32, #tpu.memory_space<vmem>>, vector<2x64xf32>,
    %c6_158 = arith.constant 6 : index
    %c0_159 = arith.constant 0 : index
    %312 = vector.load %arg12[%c6_158, %c0_159] : memref<16x256xf32, #tpu.memory_space<vmem>>, vector<2x256xf32>
    %c8_160 = arith.constant 8 : index
    %c0_161 = arith.constant 0 : index
    %313 = vector.load %arg13[%c8_160, %c0_161] : memref<16x256xf32, #tpu.memory_space<vmem>>, vector<2x256xf32>
    %314 = arith.addf %312, %313 : vector<2x256xf32>
    %cst_162 = arith.constant dense<0.000000e+00> : vector<2x256xf32>
    %315 = tpu.matmul %310, %236, %cst_162 {dimension_numbers = #tpu.dot_dimension_numbers<[1], [0], [0], [1], [0, 0, 1, 1], [], []>} : vector<2x64xf32>, vector<64x256xf32>, vector<2x256xf32> -> vector<2x256xf32>
    %316 = arith.addf %314, %315 : vector<2x256xf32>
    %317 = math.tanh %316 : vector<2x256xf32>
    %318 = vector.extract_strided_slice %317 {offsets = [0, 0], sizes = [2, 64], strides = [1, 1]} : vector<2x256xf32> to vector<2x64xf32>
    %cst_163 = arith.constant 5.000000e-01 : f32
    %319 = vector.broadcast %cst_163 : f32 to vector<2x64xf32>
    %320 = arith.mulf %319, %318 : vector<2x64xf32>
    %cst_164 = arith.constant 5.000000e-01 : f32
    %321 = vector.broadcast %cst_164 : f32 to vector<2x64xf32>
    %322 = arith.addf %320, %321 : vector<2x64xf32>
    %323 = vector.extract_strided_slice %317 {offsets = [0, 128], sizes = [2, 64], strides = [1, 1]} : vector<2x256xf32> to vector<2x64xf32>
    %324 = arith.mulf %322, %323 : vector<2x64xf32>
    %325 = vector.extract_strided_slice %317 {offsets = [0, 64], sizes = [2, 64], strides = [1, 1]} : vector<2x256xf32> to vector<2x64xf32>
    %cst_165 = arith.constant 5.000000e-01 : f32
    %326 = vector.broadcast %cst_165 : f32 to vector<2x64xf32>
    %327 = arith.mulf %326, %325 : vector<2x64xf32>
    %cst_166 = arith.constant 5.000000e-01 : f32
    %328 = vector.broadcast %cst_166 : f32 to vector<2x64xf32>
    %329 = arith.addf %327, %328 : vector<2x64xf32>
    %330 = arith.mulf %329, %303 : vector<2x64xf32>
    %331 = arith.addf %330, %324 : vector<2x64xf32>
    %332 = vector.extract_strided_slice %317 {offsets = [0, 192], sizes = [2, 64], strides = [1, 1]} : vector<2x256xf32> to vector<2x64xf32>
    %cst_167 = arith.constant 5.000000e-01 : f32
    %333 = vector.broadcast %cst_167 : f32 to vector<2x64xf32>
    %334 = arith.mulf %333, %332 : vector<2x64xf32>
    %cst_168 = arith.constant 5.000000e-01 : f32
    %335 = vector.broadcast %cst_168 : f32 to vector<2x64xf32>
    %336 = arith.addf %334, %335 : vector<2x64xf32>
    %337 = math.tanh %331 : vector<2x64xf32>
    %338 = arith.mulf %336, %337 : vector<2x64xf32>
    %c0_169 = arith.constant 0 : index
    %c192 = arith.constant 192 : index
    %339 = vector.load %arg15[%c0_169, %c192] : memref<2x512xf32, #tpu.memory_space<vmem>>, vector<2x64xf32>
    tpu.vector_store %arg15[%c0_169, %c192], %338 {strides = array<i32>} : memref<2x512xf32, #tpu.memory_space<vmem>>, vector<2x64xf32>,
    %c8_170 = arith.constant 8 : index
    %c0_171 = arith.constant 0 : index
    %340 = vector.load %arg12[%c8_170, %c0_171] : memref<16x256xf32, #tpu.memory_space<vmem>>, vector<2x256xf32>
    %c6_172 = arith.constant 6 : index
    %c0_173 = arith.constant 0 : index
    %341 = vector.load %arg13[%c6_172, %c0_173] : memref<16x256xf32, #tpu.memory_space<vmem>>, vector<2x256xf32>
    %342 = arith.addf %340, %341 : vector<2x256xf32>
    %cst_174 = arith.constant dense<0.000000e+00> : vector<2x256xf32>
    %343 = tpu.matmul %338, %236, %cst_174 {dimension_numbers = #tpu.dot_dimension_numbers<[1], [0], [0], [1], [0, 0, 1, 1], [], []>} : vector<2x64xf32>, vector<64x256xf32>, vector<2x256xf32> -> vector<2x256xf32>
    %344 = arith.addf %342, %343 : vector<2x256xf32>
    %345 = math.tanh %344 : vector<2x256xf32>
    %346 = vector.extract_strided_slice %345 {offsets = [0, 0], sizes = [2, 64], strides = [1, 1]} : vector<2x256xf32> to vector<2x64xf32>
    %cst_175 = arith.constant 5.000000e-01 : f32
    %347 = vector.broadcast %cst_175 : f32 to vector<2x64xf32>
    %348 = arith.mulf %347, %346 : vector<2x64xf32>
    %cst_176 = arith.constant 5.000000e-01 : f32
    %349 = vector.broadcast %cst_176 : f32 to vector<2x64xf32>
    %350 = arith.addf %348, %349 : vector<2x64xf32>
    %351 = vector.extract_strided_slice %345 {offsets = [0, 128], sizes = [2, 64], strides = [1, 1]} : vector<2x256xf32> to vector<2x64xf32>
    %352 = arith.mulf %350, %351 : vector<2x64xf32>
    %353 = vector.extract_strided_slice %345 {offsets = [0, 64], sizes = [2, 64], strides = [1, 1]} : vector<2x256xf32> to vector<2x64xf32>
    %cst_177 = arith.constant 5.000000e-01 : f32
    %354 = vector.broadcast %cst_177 : f32 to vector<2x64xf32>
    %355 = arith.mulf %354, %353 : vector<2x64xf32>
    %cst_178 = arith.constant 5.000000e-01 : f32
    %356 = vector.broadcast %cst_178 : f32 to vector<2x64xf32>
    %357 = arith.addf %355, %356 : vector<2x64xf32>
    %358 = arith.mulf %357, %331 : vector<2x64xf32>
    %359 = arith.addf %358, %352 : vector<2x64xf32>
    %360 = vector.extract_strided_slice %345 {offsets = [0, 192], sizes = [2, 64], strides = [1, 1]} : vector<2x256xf32> to vector<2x64xf32>
    %cst_179 = arith.constant 5.000000e-01 : f32
    %361 = vector.broadcast %cst_179 : f32 to vector<2x64xf32>
    %362 = arith.mulf %361, %360 : vector<2x64xf32>
    %cst_180 = arith.constant 5.000000e-01 : f32
    %363 = vector.broadcast %cst_180 : f32 to vector<2x64xf32>
    %364 = arith.addf %362, %363 : vector<2x64xf32>
    %365 = math.tanh %359 : vector<2x64xf32>
    %366 = arith.mulf %364, %365 : vector<2x64xf32>
    %c0_181 = arith.constant 0 : index
    %c256 = arith.constant 256 : index
    %367 = vector.load %arg15[%c0_181, %c256] : memref<2x512xf32, #tpu.memory_space<vmem>>, vector<2x64xf32>
    tpu.vector_store %arg15[%c0_181, %c256], %366 {strides = array<i32>} : memref<2x512xf32, #tpu.memory_space<vmem>>, vector<2x64xf32>,
    %c10_182 = arith.constant 10 : index
    %c0_183 = arith.constant 0 : index
    %368 = vector.load %arg12[%c10_182, %c0_183] : memref<16x256xf32, #tpu.memory_space<vmem>>, vector<2x256xf32>
    %c4_184 = arith.constant 4 : index
    %c0_185 = arith.constant 0 : index
    %369 = vector.load %arg13[%c4_184, %c0_185] : memref<16x256xf32, #tpu.memory_space<vmem>>, vector<2x256xf32>
    %370 = arith.addf %368, %369 : vector<2x256xf32>
    %cst_186 = arith.constant dense<0.000000e+00> : vector<2x256xf32>
    %371 = tpu.matmul %366, %236, %cst_186 {dimension_numbers = #tpu.dot_dimension_numbers<[1], [0], [0], [1], [0, 0, 1, 1], [], []>} : vector<2x64xf32>, vector<64x256xf32>, vector<2x256xf32> -> vector<2x256xf32>
    %372 = arith.addf %370, %371 : vector<2x256xf32>
    %373 = math.tanh %372 : vector<2x256xf32>
    %374 = vector.extract_strided_slice %373 {offsets = [0, 0], sizes = [2, 64], strides = [1, 1]} : vector<2x256xf32> to vector<2x64xf32>
    %cst_187 = arith.constant 5.000000e-01 : f32
    %375 = vector.broadcast %cst_187 : f32 to vector<2x64xf32>
    %376 = arith.mulf %375, %374 : vector<2x64xf32>
    %cst_188 = arith.constant 5.000000e-01 : f32
    %377 = vector.broadcast %cst_188 : f32 to vector<2x64xf32>
    %378 = arith.addf %376, %377 : vector<2x64xf32>
    %379 = vector.extract_strided_slice %373 {offsets = [0, 128], sizes = [2, 64], strides = [1, 1]} : vector<2x256xf32> to vector<2x64xf32>
    %380 = arith.mulf %378, %379 : vector<2x64xf32>
    %381 = vector.extract_strided_slice %373 {offsets = [0, 64], sizes = [2, 64], strides = [1, 1]} : vector<2x256xf32> to vector<2x64xf32>
    %cst_189 = arith.constant 5.000000e-01 : f32
    %382 = vector.broadcast %cst_189 : f32 to vector<2x64xf32>
    %383 = arith.mulf %382, %381 : vector<2x64xf32>
    %cst_190 = arith.constant 5.000000e-01 : f32
    %384 = vector.broadcast %cst_190 : f32 to vector<2x64xf32>
    %385 = arith.addf %383, %384 : vector<2x64xf32>
    %386 = arith.mulf %385, %359 : vector<2x64xf32>
    %387 = arith.addf %386, %380 : vector<2x64xf32>
    %388 = vector.extract_strided_slice %373 {offsets = [0, 192], sizes = [2, 64], strides = [1, 1]} : vector<2x256xf32> to vector<2x64xf32>
    %cst_191 = arith.constant 5.000000e-01 : f32
    %389 = vector.broadcast %cst_191 : f32 to vector<2x64xf32>
    %390 = arith.mulf %389, %388 : vector<2x64xf32>
    %cst_192 = arith.constant 5.000000e-01 : f32
    %391 = vector.broadcast %cst_192 : f32 to vector<2x64xf32>
    %392 = arith.addf %390, %391 : vector<2x64xf32>
    %393 = math.tanh %387 : vector<2x64xf32>
    %394 = arith.mulf %392, %393 : vector<2x64xf32>
    %c0_193 = arith.constant 0 : index
    %c320 = arith.constant 320 : index
    %395 = vector.load %arg15[%c0_193, %c320] : memref<2x512xf32, #tpu.memory_space<vmem>>, vector<2x64xf32>
    tpu.vector_store %arg15[%c0_193, %c320], %394 {strides = array<i32>} : memref<2x512xf32, #tpu.memory_space<vmem>>, vector<2x64xf32>,
    %c12_194 = arith.constant 12 : index
    %c0_195 = arith.constant 0 : index
    %396 = vector.load %arg12[%c12_194, %c0_195] : memref<16x256xf32, #tpu.memory_space<vmem>>, vector<2x256xf32>
    %c2_196 = arith.constant 2 : index
    %c0_197 = arith.constant 0 : index
    %397 = vector.load %arg13[%c2_196, %c0_197] : memref<16x256xf32, #tpu.memory_space<vmem>>, vector<2x256xf32>
    %398 = arith.addf %396, %397 : vector<2x256xf32>
    %cst_198 = arith.constant dense<0.000000e+00> : vector<2x256xf32>
    %399 = tpu.matmul %394, %236, %cst_198 {dimension_numbers = #tpu.dot_dimension_numbers<[1], [0], [0], [1], [0, 0, 1, 1], [], []>} : vector<2x64xf32>, vector<64x256xf32>, vector<2x256xf32> -> vector<2x256xf32>
    %400 = arith.addf %398, %399 : vector<2x256xf32>
    %401 = math.tanh %400 : vector<2x256xf32>
    %402 = vector.extract_strided_slice %401 {offsets = [0, 0], sizes = [2, 64], strides = [1, 1]} : vector<2x256xf32> to vector<2x64xf32>
    %cst_199 = arith.constant 5.000000e-01 : f32
    %403 = vector.broadcast %cst_199 : f32 to vector<2x64xf32>
    %404 = arith.mulf %403, %402 : vector<2x64xf32>
    %cst_200 = arith.constant 5.000000e-01 : f32
    %405 = vector.broadcast %cst_200 : f32 to vector<2x64xf32>
    %406 = arith.addf %404, %405 : vector<2x64xf32>
    %407 = vector.extract_strided_slice %401 {offsets = [0, 128], sizes = [2, 64], strides = [1, 1]} : vector<2x256xf32> to vector<2x64xf32>
    %408 = arith.mulf %406, %407 : vector<2x64xf32>
    %409 = vector.extract_strided_slice %401 {offsets = [0, 64], sizes = [2, 64], strides = [1, 1]} : vector<2x256xf32> to vector<2x64xf32>
    %cst_201 = arith.constant 5.000000e-01 : f32
    %410 = vector.broadcast %cst_201 : f32 to vector<2x64xf32>
    %411 = arith.mulf %410, %409 : vector<2x64xf32>
    %cst_202 = arith.constant 5.000000e-01 : f32
    %412 = vector.broadcast %cst_202 : f32 to vector<2x64xf32>
    %413 = arith.addf %411, %412 : vector<2x64xf32>
    %414 = arith.mulf %413, %387 : vector<2x64xf32>
    %415 = arith.addf %414, %408 : vector<2x64xf32>
    %416 = vector.extract_strided_slice %401 {offsets = [0, 192], sizes = [2, 64], strides = [1, 1]} : vector<2x256xf32> to vector<2x64xf32>
    %cst_203 = arith.constant 5.000000e-01 : f32
    %417 = vector.broadcast %cst_203 : f32 to vector<2x64xf32>
    %418 = arith.mulf %417, %416 : vector<2x64xf32>
    %cst_204 = arith.constant 5.000000e-01 : f32
    %419 = vector.broadcast %cst_204 : f32 to vector<2x64xf32>
    %420 = arith.addf %418, %419 : vector<2x64xf32>
    %421 = math.tanh %415 : vector<2x64xf32>
    %422 = arith.mulf %420, %421 : vector<2x64xf32>
    %c0_205 = arith.constant 0 : index
    %c384 = arith.constant 384 : index
    %423 = vector.load %arg15[%c0_205, %c384] : memref<2x512xf32, #tpu.memory_space<vmem>>, vector<2x64xf32>
    tpu.vector_store %arg15[%c0_205, %c384], %422 {strides = array<i32>} : memref<2x512xf32, #tpu.memory_space<vmem>>, vector<2x64xf32>,
    %c14_206 = arith.constant 14 : index
    %c0_207 = arith.constant 0 : index
    %424 = vector.load %arg12[%c14_206, %c0_207] : memref<16x256xf32, #tpu.memory_space<vmem>>, vector<2x256xf32>
    %c0_208 = arith.constant 0 : index
    %c0_209 = arith.constant 0 : index
    %425 = vector.load %arg13[%c0_208, %c0_209] : memref<16x256xf32, #tpu.memory_space<vmem>>, vector<2x256xf32>
    %426 = arith.addf %424, %425 : vector<2x256xf32>
    %cst_210 = arith.constant dense<0.000000e+00> : vector<2x256xf32>
    %427 = tpu.matmul %422, %236, %cst_210 {dimension_numbers = #tpu.dot_dimension_numbers<[1], [0], [0], [1], [0, 0, 1, 1], [], []>} : vector<2x64xf32>, vector<64x256xf32>, vector<2x256xf32> -> vector<2x256xf32>
    %428 = arith.addf %426, %427 : vector<2x256xf32>
    %429 = math.tanh %428 : vector<2x256xf32>
    %430 = vector.extract_strided_slice %429 {offsets = [0, 0], sizes = [2, 64], strides = [1, 1]} : vector<2x256xf32> to vector<2x64xf32>
    %cst_211 = arith.constant 5.000000e-01 : f32
    %431 = vector.broadcast %cst_211 : f32 to vector<2x64xf32>
    %432 = arith.mulf %431, %430 : vector<2x64xf32>
    %cst_212 = arith.constant 5.000000e-01 : f32
    %433 = vector.broadcast %cst_212 : f32 to vector<2x64xf32>
    %434 = arith.addf %432, %433 : vector<2x64xf32>
    %435 = vector.extract_strided_slice %429 {offsets = [0, 128], sizes = [2, 64], strides = [1, 1]} : vector<2x256xf32> to vector<2x64xf32>
    %436 = arith.mulf %434, %435 : vector<2x64xf32>
    %437 = vector.extract_strided_slice %429 {offsets = [0, 64], sizes = [2, 64], strides = [1, 1]} : vector<2x256xf32> to vector<2x64xf32>
    %cst_213 = arith.constant 5.000000e-01 : f32
    %438 = vector.broadcast %cst_213 : f32 to vector<2x64xf32>
    %439 = arith.mulf %438, %437 : vector<2x64xf32>
    %cst_214 = arith.constant 5.000000e-01 : f32
    %440 = vector.broadcast %cst_214 : f32 to vector<2x64xf32>
    %441 = arith.addf %439, %440 : vector<2x64xf32>
    %442 = arith.mulf %441, %415 : vector<2x64xf32>
    %443 = arith.addf %442, %436 : vector<2x64xf32>
    %444 = vector.extract_strided_slice %429 {offsets = [0, 192], sizes = [2, 64], strides = [1, 1]} : vector<2x256xf32> to vector<2x64xf32>
    %cst_215 = arith.constant 5.000000e-01 : f32
    %445 = vector.broadcast %cst_215 : f32 to vector<2x64xf32>
    %446 = arith.mulf %445, %444 : vector<2x64xf32>
    %cst_216 = arith.constant 5.000000e-01 : f32
    %447 = vector.broadcast %cst_216 : f32 to vector<2x64xf32>
    %448 = arith.addf %446, %447 : vector<2x64xf32>
    %449 = math.tanh %443 : vector<2x64xf32>
    %450 = arith.mulf %448, %449 : vector<2x64xf32>
    %c0_217 = arith.constant 0 : index
    %c448 = arith.constant 448 : index
    %451 = vector.load %arg15[%c0_217, %c448] : memref<2x512xf32, #tpu.memory_space<vmem>>, vector<2x64xf32>
    tpu.vector_store %arg15[%c0_217, %c448], %450 {strides = array<i32>} : memref<2x512xf32, #tpu.memory_space<vmem>>, vector<2x64xf32>,
    %c0_218 = arith.constant 0 : index
    %c0_219 = arith.constant 0 : index
    %452 = vector.load %arg15[%c0_218, %c0_219] : memref<2x512xf32, #tpu.memory_space<vmem>>, vector<2x512xf32>
    %c0_220 = arith.constant 0 : index
    %c0_221 = arith.constant 0 : index
    %453 = vector.load %arg9[%c0_220, %c0_221] : memref<512x1xf32, #tpu.memory_space<vmem>>, vector<512x1xf32>
    %cst_222 = arith.constant dense<0.000000e+00> : vector<2x1xf32>
    %454 = tpu.matmul %452, %453, %cst_222 {dimension_numbers = #tpu.dot_dimension_numbers<[1], [0], [0], [1], [0, 0, 1, 1], [], []>} : vector<2x512xf32>, vector<512x1xf32>, vector<2x1xf32> -> vector<2x1xf32>
    %c0_223 = arith.constant 0 : index
    %c0_224 = arith.constant 0 : index
    %455 = vector.load %arg10[%c0_223, %c0_224] : memref<1x1xf32, #tpu.memory_space<vmem>>, vector<1x1xf32>
    %456 = vector.broadcast %455 : vector<1x1xf32> to vector<2x1xf32>
    %457 = arith.addf %454, %456 : vector<2x1xf32>
    %c0_225 = arith.constant 0 : index
    %c0_226 = arith.constant 0 : index
    %458 = vector.load %arg11[%c0_225, %c0_226] : memref<2x1xf32, #tpu.memory_space<vmem>>, vector<2x1xf32>
    tpu.vector_store %arg11[%c0_225, %c0_226], %457 {strides = array<i32>} : memref<2x1xf32, #tpu.memory_space<vmem>>, vector<2x1xf32>,
    return
  }
}

</mosaic_0001>

<bundles_post_ra>
// kernel: _lambda_.1
= control target key start
LH: loop header
LB: loop body
LE: loop exit
PB: predicated region body
PF: predicated region fallthrough
CT: control target
= control target key end

     0   :  { %s2695_s0 = inlined_call_operand.vmem [shape: f32[16,4], index: 0, kind: input, shape index: {}]   ;;  %s2696_s1 = inlined_call_operand.vmem [shape: f32[4,256], index: 1, kind: input, shape index: {}]   ;;  %s2697_s2 = inlined_call_operand.vmem [shape: f32[4,256], index: 2, kind: input, shape index: {}]   ;;  %s2698_s3 = inlined_call_operand.hbm [shape: f32[64,256], index: 3, kind: input, shape index: {}]   ;;  %s2699_s4 = inlined_call_operand.vmem [shape: f32[1,256], index: 4, kind: input, shape index: {}]   ;;  %s2700_s5 = inlined_call_operand.hbm [shape: f32[64,256], index: 5, kind: input, shape index: {}]   ;;  %s2701_s6 = inlined_call_operand.hbm [shape: f32[64,256], index: 6, kind: input, shape index: {}]   ;;  %s2702_s7 = inlined_call_operand.hbm [shape: f32[64,256], index: 7, kind: input, shape index: {}]   ;;  %s2703_s8 = inlined_call_operand.vmem [shape: f32[1,256], index: 8, kind: input, shape index: {}]   ;;  %s2704_s9 = inlined_call_operand.hbm [shape: f32[512,1], index: 9, kind: input, shape index: {}]   ;;  %s2705_s10 = inlined_call_operand.<no memory space> [shape: f32[1,1], index: 10, kind: input, shape index: {}]   ;;  %s2706_s11 = inlined_call_operand.vmem [shape: f32[2,1], index: 11, kind: output, shape index: {}]  }
   0x1   :  { %v16_v0 = vstv %s2705_s10 }
   0x2   :  { %17 = vst [vmem:[#allocation6] sm:$0x1] %v16_v0 }
   0x3   :  { %18 = vsyncpa [#allocation8], 0 }
   0x4   :  { %19 = vsyncpa [#allocation10], 0 }
   0x5   :  { %20 = vsyncpa [#allocation13], 0  ;;  %s46_s21 = sshll.u32 %s2700_s5, 4  ;;  %s2167_s22 = smov [#allocation9]   ;;  %s47_s21 = int_to_ptr.hbm [resolvable:$true] %s46_s21 }
   0x6   :  { %s48_s23 = sshll.u32 %s2167_s22, 4  ;;  %s72_s26 = sshll.u32 %s2702_s7, 4  ;;  %s49_s23 = int_to_ptr.vmem [resolvable:$true] %s48_s23  ;;  %s73_s26 = int_to_ptr.hbm [resolvable:$true] %s72_s26 }
   0x7   :  { %s2168_s27 = smov 256   ;;  %s2169_s28 = smov 16  }
   0x8   :  { %54 = dma.hbm_to_vmem [thread:$0]  %s47_s21, 2048, %s49_s23, [#allocation10], %s2168_s27, %s2168_s27, %s2169_s28  }
   0x9   :  { %s2170_s10 = smov [#allocation12]   ;;  %s31_s13 = sshll.u32 %s2698_s3, 4  ;;  %s32_s13 = int_to_ptr.hbm [resolvable:$true] %s31_s13 }
   0xa   :  { %s74_s29 = sshll.u32 %s2170_s10, 4  ;;  %s59_s15 = sshll.u32 %s2701_s6, 4  ;;  %s75_s29 = int_to_ptr.vmem [resolvable:$true] %s74_s29  ;;  %s60_s15 = int_to_ptr.hbm [resolvable:$true] %s59_s15 }
   0xb   :  { %80 = dma.hbm_to_vmem [thread:$0]  %s73_s26, 2048, %s75_s29, [#allocation13], %s2168_s27, %s2168_s27, %s2169_s28  }
   0xc   :  { %s2171_s16 = smov [#allocation7]   ;;  %s2172_s7 = smov [#allocation11]  }
   0xd   :  { %s33_s17 = sshll.u32 %s2171_s16, 4  ;;  %s61_s18 = sshll.u32 %s2172_s7, 4  ;;  %s34_s17 = int_to_ptr.vmem [resolvable:$true] %s33_s17  ;;  %s62_s18 = int_to_ptr.vmem [resolvable:$true] %s61_s18 }
   0xe   :  { %39 = dma.hbm_to_vmem [thread:$0]  %s32_s13, 2048, %s34_s17, [#allocation8], %s2168_s27, %s2168_s27, %s2169_s28  }
   0xf   :  { %s87_s21 = sshll.u32 %s2704_s9, 4  ;;  %s2173_s3 = smov [#allocation14]   ;;  %s88_s21 = int_to_ptr.hbm [resolvable:$true] %s87_s21 }
  0x10   :  { %67 = dma.hbm_to_vmem [thread:$0]  %s60_s15, 2048, %s62_s18, [#allocation10], %s2168_s27, %s2168_s27, %s2169_s28  }
  0x11   :  { %s89_s22 = sshll.u32 %s2173_s3, 4  ;;  %s2174_s23 = smov 128   ;;  %s90_s22 = int_to_ptr.vmem [resolvable:$true] %s89_s22 }
  0x12   :  { %s2175_s24 = smov 8  }
  0x13   :  { %95 = dma.hbm_to_vmem [thread:$0]  %s88_s21, 8192, %s90_s22, [#allocation13], %s2174_s23, %s2174_s23, %s2175_s24  }
  0x14   :  { %2161 = dma.done.wait [#allocation8], 2048  }
  0x15   :  { %2162 = vsyncadd [#allocation8], 4294965248 }
  0x16   :  { %2163 = dma.done.wait [#allocation10], 4096  }
  0x17   :  { %2164 = vsyncadd [#allocation10], 4294963200 }
  0x18   :  { %2165 = dma.done.wait [#allocation13], 10240  }
  0x19   :  { %2166 = vsyncadd [#allocation13], 4294957056  ;;  %v120_v1 = vld [vmem:[%s2696_s1] sm:$0xff]  ;;  %vm138_vm0 = vcmask 1043456   ;;  %vm131_vm1 = vcmask 31744   ;;  %v119_v6 = vld [vmem:[%s2695_s0 + $0x8] sm:$0xff] }
  0x1a   :  { %128 = vst [vmem:[#allocation1] ss:$2 sm:$0xff] %v120_v1  ;;  %v193_v2 = vld [vmem:[%s2697_s2] sm:$0xff]  ;;  %v2283_v39 = vld [vmem:[#allocation7 + $0x70] sm:$0xff]  ;;  %v2291_v42 = vld [vmem:[#allocation7 + $0x68] sm:$0xff]  ;;  %vm297_vm2 = vcmask 517120  }
  0x1b   :  { %v118_v3 = vld [vmem:[%s2695_s0] sm:$0xff]  ;;  %s2176_s0 = smov 64   ;;  %v2293_v43 = vld [vmem:[#allocation7 + $0x50] sm:$0xff]  ;;  %v2303_v46 = vld [vmem:[#allocation7 + $0x48] sm:$0xff]  ;;  %vm311_vm3 = vcmask 523264   ;;  %vm386_vm4 = vcmask 519170  }
  0x1c   :  { %v121_v9 = vld [vmem:[%s2699_s4] sm:$0x3]  ;;  %v2309_v47 = vld [vmem:[#allocation7 + $0x30] sm:$0xff]  ;;  %v2319_v50 = vld [vmem:[#allocation7 + $0x28] sm:$0xff]  ;;  %vm475_vm5 = vcmask 521220   ;;  %vm564_vm6 = vcmask 523270  }
  0x1d   :  { %v123_v10 = vperm.slane %v121_v9, 0  ;;  %v124_v11 = vperm.slane %v121_v9, 1  ;;  %v2285_v40 = vld [vmem:[#allocation7 + $0x78] sm:$0xff]  ;;  %v2287_v41 = vld [vmem:[#allocation7 + $0x60] sm:$0xff]  ;;  %v2325_v51 = vld [vmem:[#allocation7 + $0x10] sm:$0xff]  ;;  %vm1188_vm7 = vcmask 1041920  }
  0x1e   :  { %v2295_v44 = vld [vmem:[#allocation7 + $0x58] sm:$0xff]  ;;  %v2301_v45 = vld [vmem:[#allocation7 + $0x40] sm:$0xff]  ;;  %v2335_v54 = vld [vmem:[#allocation7 + $0x8] sm:$0xff]  ;;  %vm1877_vm8 = vcmask 1024  }
  0x1f   :  { %v2311_v48 = vld [vmem:[#allocation7 + $0x38] sm:$0xff]  ;;  %v2317_v49 = vld [vmem:[#allocation7 + $0x20] sm:$0xff] }
  0x20   :  { %v2327_v52 = vld [vmem:[#allocation7 + $0x18] sm:$0xff]  ;;  %v2333_v53 = vld [vmem:[#allocation7] sm:$0xff] }
  0x21   :  { %v129_v4 = vld.sshfl [vmem:[#allocation1] sm:$0xff pattern:$0x75316420]  ;;  %v130_v5 = vld.sshfl [vmem:[#allocation1 + $0x8] sm:$0xff pattern:$0x75316420] }
  0x22   :  { %1886 = vmatpush.msk.msra.mxu0 %vm138_vm0, %v129_v4  ;;  %195 = vst [vmem:[#allocation1] ss:$2 sm:$0xff] %v193_v2  ;;  %1889 = vmatpush.msk.msra.mxu1 %vm138_vm0, %v130_v5 }
  0x23   :  { %1887 = vmatmul.msk.f32.vlgmr.msra.gmra.mxu0 %vm131_vm1, %v118_v3  ;;  %1890 = vmatmul.msk.f32.vlgmr.msra.gmra.mxu1 %vm131_vm1, %v118_v3 }
  0x24   :  { %322 = vmatpush.msrb.mxu0 %v2283_v39  ;;  %342 = vmatpush.msrb.mxu1 %v2285_v40 }
  0x26   :  { %323 = vmatpush.msrb.mxu0 %v2287_v41  ;;  %343 = vmatpush.msrb.mxu1 %v2291_v42 }
  0x28   :  { %324 = vmatpush.msrb.mxu0 %v2293_v43  ;;  %344 = vmatpush.msrb.mxu1 %v2295_v44 }
  0x29   :  { %v196_v7 = vld.sshfl [vmem:[#allocation1] sm:$0xff pattern:$0x75316420]  ;;  %v197_v8 = vld.sshfl [vmem:[#allocation1 + $0x8] sm:$0xff pattern:$0x75316420] }
  0x2a   :  { %1892 = vmatpush.msk.msra.mxu2 %vm138_vm0, %v196_v7  ;;  %1895 = vmatpush.msk.msra.mxu3 %vm138_vm0, %v197_v8 }
  0x2b   :  { %1893 = vmatmul.msk.f32.vlgmr.msra.gmra.mxu2 %vm131_vm1, %v118_v3  ;;  %1896 = vmatmul.msk.f32.vlgmr.msra.gmra.mxu3 %vm131_vm1, %v118_v3 }
  0x2c   :  { %1888 = vmatmul.msk.f32.gmra.mxu0 %vm131_vm1, %v119_v6  ;;  %1891 = vmatmul.msk.f32.gmra.mxu1 %vm131_vm1, %v119_v6 }
  0x2d   :  { %413 = vmatpush.msrb.mxu2 %v2283_v39  ;;  %433 = vmatpush.msrb.mxu3 %v2285_v40 }
  0x2e   :  { %325 = vmatpush.msrb.mxu0 %v2301_v45  ;;  %345 = vmatpush.msrb.mxu1 %v2303_v46 }
  0x2f   :  { %414 = vmatpush.msrb.mxu2 %v2287_v41  ;;  %434 = vmatpush.msrb.mxu3 %v2291_v42 }
  0x30   :  { %326 = vmatpush.msrb.mxu0 %v2309_v47  ;;  %346 = vmatpush.msrb.mxu1 %v2311_v48 }
  0x31   :  { %415 = vmatpush.msrb.mxu2 %v2293_v43  ;;  %435 = vmatpush.msrb.mxu3 %v2295_v44 }
  0x32   :  { %327 = vmatpush.msrb.mxu0 %v2317_v49  ;;  %347 = vmatpush.msrb.mxu1 %v2319_v50 }
  0x33   :  { %1894 = vmatmul.msk.f32.gmra.mxu2 %vm131_vm1, %v119_v6  ;;  %1897 = vmatmul.msk.f32.gmra.mxu3 %vm131_vm1, %v119_v6 }
  0x34   :  { %416 = vmatpush.msrb.mxu2 %v2301_v45  ;;  %436 = vmatpush.msrb.mxu3 %v2303_v46 }
  0x35   :  { %328 = vmatpush.msrb.mxu0 %v2325_v51  ;;  %348 = vmatpush.msrb.mxu1 %v2327_v52 }
  0x36   :  { %417 = vmatpush.msrb.mxu2 %v2309_v47  ;;  %437 = vmatpush.msrb.mxu3 %v2311_v48 }
  0x37   :  { %329 = vmatpush.msrb.mxu0 %v2333_v53  ;;  %349 = vmatpush.msrb.mxu1 %v2335_v54 }
  0x38   :  { %418 = vmatpush.msrb.mxu2 %v2317_v49  ;;  %438 = vmatpush.msrb.mxu3 %v2319_v50 }
  0x39   :  { %502 = vmatpush.msra.mxu0 %v2283_v39  ;;  %522 = vmatpush.msra.mxu1 %v2285_v40 }
  0x3a   :  { %419 = vmatpush.msrb.mxu2 %v2325_v51  ;;  %439 = vmatpush.msrb.mxu3 %v2327_v52 }
  0x3b   :  { %503 = vmatpush.msra.mxu0 %v2287_v41  ;;  %523 = vmatpush.msra.mxu1 %v2291_v42 }
  0x3c   :  { %420 = vmatpush.msrb.mxu2 %v2333_v53  ;;  %440 = vmatpush.msrb.mxu3 %v2335_v54 }
  0x3d   :  { %504 = vmatpush.msra.mxu0 %v2293_v43  ;;  %524 = vmatpush.msra.mxu1 %v2295_v44 }
  0x3e   :  { %591 = vmatpush.msra.mxu2 %v2283_v39  ;;  %611 = vmatpush.msra.mxu3 %v2285_v40 }
  0x3f   :  { %505 = vmatpush.msra.mxu0 %v2301_v45  ;;  %525 = vmatpush.msra.mxu1 %v2303_v46 }
  0x40   :  { %592 = vmatpush.msra.mxu2 %v2287_v41  ;;  %612 = vmatpush.msra.mxu3 %v2291_v42 }
  0x41   :  { %506 = vmatpush.msra.mxu0 %v2309_v47  ;;  %526 = vmatpush.msra.mxu1 %v2311_v48 }
  0x42   :  { %593 = vmatpush.msra.mxu2 %v2293_v43  ;;  %613 = vmatpush.msra.mxu3 %v2295_v44 }
  0x43   :  { %507 = vmatpush.msra.mxu0 %v2317_v49  ;;  %527 = vmatpush.msra.mxu1 %v2319_v50 }
  0x44   :  { %594 = vmatpush.msra.mxu2 %v2301_v45  ;;  %614 = vmatpush.msra.mxu3 %v2303_v46 }
  0x45   :  { %508 = vmatpush.msra.mxu0 %v2325_v51  ;;  %528 = vmatpush.msra.mxu1 %v2327_v52 }
  0x46   :  { %595 = vmatpush.msra.mxu2 %v2309_v47  ;;  %615 = vmatpush.msra.mxu3 %v2311_v48 }
  0x47   :  { %509 = vmatpush.msra.mxu0 %v2333_v53  ;;  %529 = vmatpush.msra.mxu1 %v2335_v54 }
  0x48   :  { %596 = vmatpush.msra.mxu2 %v2317_v49  ;;  %616 = vmatpush.msra.mxu3 %v2319_v50 }
  0x4a   :  { %597 = vmatpush.msra.mxu2 %v2325_v51  ;;  %617 = vmatpush.msra.mxu3 %v2327_v52 }
  0x4c   :  { %598 = vmatpush.msra.mxu2 %v2333_v53  ;;  %618 = vmatpush.msra.mxu3 %v2335_v54 }
  0xa0   :  { %v160_v12 = vpop.f32.mrf.mxu0  ;;  %v183_v13 = vpop.f32.mrf.mxu1 }
  0xa1   :  { %v161_v14 = vadd.f32 %v160_v12, %v123_v10  ;;  %v184_v15 = vadd.f32 %v183_v13, %v124_v11 }
  0xa3   :  { %189 = vst [vmem:[#allocation2 + $0x10] sm:$0xff] %v161_v14 }
  0xa4   :  { %190 = vst [vmem:[#allocation2] sm:$0xff] %v184_v15 }
  0xa9   :  { %v163_v16 = vpop.f32.mrf.mxu0  ;;  %v186_v17 = vpop.f32.mrf.mxu1 }
  0xaa   :  { %v164_v18 = vadd.f32 %v163_v16, %v123_v10  ;;  %v187_v19 = vadd.f32 %v186_v17, %v124_v11  ;;  %v268_v24 = vld [vmem:[#allocation2 + $0x10] sm:$0x3]  ;;  %v299_v63 = vld [vmem:[#allocation2 + $0x10] sm:$0xc] }
  0xab   :  { %v269_v26 = vld [vmem:[#allocation2] sm:$0x3]  ;;  %v300_v2 = vld [vmem:[#allocation2] sm:$0xc] }
  0xac   :  { %191 = vst [vmem:[#allocation2 + $0x18] sm:$0xff] %v164_v18 }
  0xad   :  { %192 = vst [vmem:[#allocation2 + $0x8] sm:$0xff] %v187_v19 }
  0xae   :  { %v219_v20 = vpop.f32.mrf.mxu2  ;;  %v242_v21 = vpop.f32.mrf.mxu3 }
  0xaf   :  { %248 = vst [vmem:[#allocation3] sm:$0xff] %v219_v20 }
  0xb0   :  { %249 = vst [vmem:[#allocation3 + $0x18] sm:$0xff] %v242_v21 }
  0xb6   :  { %v222_v22 = vpop.f32.mrf.mxu2  ;;  %v245_v23 = vpop.f32.mrf.mxu3 }
  0xb7   :  { %250 = vst [vmem:[#allocation3 + $0x8] sm:$0xff] %v222_v22 }
  0xb8   :  { %251 = vst [vmem:[#allocation3 + $0x10] sm:$0xff] %v245_v23 }
  0xbe   :  { %v270_v25 = vld [vmem:[#allocation3 + $0x8] sm:$0xc0]  ;;  %v301_v60 = vld [vmem:[#allocation3 + $0x8] sm:$0x30] }
  0xbf   :  { %v271_v27 = vld [vmem:[#allocation3 + $0x10] sm:$0xc0]  ;;  %v274_v28 = vrot.slane %v270_v25, 6  ;;  %v302_v61 = vld [vmem:[#allocation3 + $0x10] sm:$0x30]  ;;  %v305_v62 = vrot.slane %v301_v60, 2 }
  0xc0   :  { %v275_v29 = vrot.slane %v271_v27, 6  ;;  %v306_v0 = vrot.slane %v302_v61, 2  ;;  %v390_v25 = vld [vmem:[#allocation3 + $0x8] sm:$0xc] }
  0xc1   :  { %v278_v30 = vadd.f32 %v274_v28, %v268_v24  ;;  %v309_v4 = vadd.f32 %v305_v62, %v299_v63  ;;  %v394_v27 = vrot.slane %v390_v25, 6  ;;  %v388_v28 = vld [vmem:[#allocation2 + $0x10] sm:$0x30]  ;;  %v567_v25 = vld [vmem:[#allocation2 + $0x8] sm:$0x3] }
  0xc2   :  { %v279_v31 = vadd.f32 %v275_v29, %v269_v26  ;;  %v310_v8 = vadd.f32 %v306_v0, %v300_v2  ;;  %v391_v26 = vld [vmem:[#allocation3 + $0x10] sm:$0xc] }
  0xc3   :  { %1945 = vtanh.f32 %v278_v30  ;;  %v395_v29 = vrot.slane %v391_v26, 6 }
  0xc4   :  { %1947 = vtanh.f32 %v279_v31  ;;  %v389_v31 = vld [vmem:[#allocation2] sm:$0x30] }
  0xc9   :  { %v1946_v32 = vpop.eup %1945 }
  0xca   :  { %v282_v33 = vmul.f32 0.5, %v1946_v32  ;;  %v2278_v34 = vpop.eup %1947 }
  0xcb   :  { %v285_v55 = vmul.f32 0.5, %v2278_v34 }
  0xcc   :  { %v283_v35 = vadd.f32 0.5, %v282_v33  ;;  %v398_v33 = vadd.f32 %v394_v27, %v388_v28 }
  0xcd   :  { %v286_v56 = vadd.f32 0.5, %v285_v55 }
  0xce   :  { %v284_v36 = vmul.f32 %v2278_v34, %v283_v35 }
  0xd0   :  { %v368_v37 = vrot.slane %v284_v36, 6  ;;  %1949 = vtanh.f32 %v284_v36 }
  0xd2   :  { %369 = vrot.lane.b32.xlu1 %v368_v37, %s2176_s0  ;;  %v399_v37 = vadd.f32 %v395_v29, %v389_v31 }
  0xd6   :  { %v1950_v38 = vpop.eup %1949 }
  0xd7   :  { %289 = vrot.lane.b32.xlu0 %v1950_v38, %s2176_s0 }
 0x144   :  { %v370_v15 = vpop.permute.xlu1 %369 }
 0x149   :  { %v290_v57 = vpop.permute.xlu0 %289 }
 0x14a   :  { %v292_v58 = vmul.f32 %v290_v57, %v286_v56 }
 0x14c   :  { %294 = vrot.lane.b32.xlu0 %v292_v58, %s2176_s0 }
 0x1be   :  { %v295_v59 = vpop.permute.xlu0 %294 }
 0x1bf   :  { %298 = vst.msk [vmem:[#allocation4] sm:$0x3] %vm297_vm2, %v295_v59  ;;  %1898 = vmatmul.msk.f32.vlgmr.msrb.gmra.mxu0 %vm311_vm3, %v295_v59  ;;  %1899 = vmatmul.msk.f32.vlgmr.msrb.gmra.mxu1 %vm311_vm3, %v295_v59 }
 0x1c0   :  { %670 = vmatpush.msrb.mxu0 %v2283_v39  ;;  %690 = vmatpush.msrb.mxu1 %v2285_v40 }
 0x1c2   :  { %671 = vmatpush.msrb.mxu0 %v2287_v41  ;;  %691 = vmatpush.msrb.mxu1 %v2291_v42 }
 0x1c4   :  { %672 = vmatpush.msrb.mxu0 %v2293_v43  ;;  %692 = vmatpush.msrb.mxu1 %v2295_v44 }
 0x1c6   :  { %673 = vmatpush.msrb.mxu0 %v2301_v45  ;;  %693 = vmatpush.msrb.mxu1 %v2303_v46 }
 0x1c8   :  { %674 = vmatpush.msrb.mxu0 %v2309_v47  ;;  %694 = vmatpush.msrb.mxu1 %v2311_v48 }
 0x1ca   :  { %675 = vmatpush.msrb.mxu0 %v2317_v49  ;;  %695 = vmatpush.msrb.mxu1 %v2319_v50 }
 0x1cc   :  { %676 = vmatpush.msrb.mxu0 %v2325_v51  ;;  %696 = vmatpush.msrb.mxu1 %v2327_v52 }
 0x1ce   :  { %677 = vmatpush.msrb.mxu0 %v2333_v53  ;;  %697 = vmatpush.msrb.mxu1 %v2335_v54 }
 0x23c   :  { %v331_v1 = vpop.f32.mrf.mxu0  ;;  %v351_v3 = vpop.f32.mrf.mxu1 }
 0x23d   :  { %v356_v5 = vrot.slane %v331_v1, 6  ;;  %v357_v6 = vrot.slane %v351_v3, 6 }
 0x23f   :  { %v360_v7 = vadd.f32 %v356_v5, %v309_v4  ;;  %v361_v9 = vadd.f32 %v357_v6, %v310_v8 }
 0x241   :  { %1951 = vtanh.f32 %v360_v7 }
 0x242   :  { %1953 = vtanh.f32 %v361_v9 }
 0x247   :  { %v1952_v10 = vpop.eup %1951 }
 0x248   :  { %v364_v11 = vmul.f32 0.5, %v1952_v10  ;;  %v1954_v13 = vpop.eup %1953 }
 0x249   :  { %v378_v19 = vmul.f32 0.5, %v1954_v13 }
 0x24a   :  { %v365_v12 = vadd.f32 0.5, %v364_v11 }
 0x24b   :  { %v379_v20 = vadd.f32 0.5, %v378_v19  ;;  %v568_v19 = vld [vmem:[#allocation3] sm:$0xc0] }
 0x24c   :  { %v366_v14 = vmul.f32 %v1954_v13, %v365_v12  ;;  %v372_v16 = vmul.f32 %v370_v15, %v365_v12 }
 0x24e   :  { %374 = vrot.lane.b32.xlu1 %v366_v14, %s2176_s0 }
 0x2c0   :  { %v375_v17 = vpop.permute.xlu1 %374 }
 0x2c1   :  { %v377_v18 = vadd.f32 %v375_v17, %v372_v16 }
 0x2c3   :  { %1955 = vtanh.f32 %v377_v18  ;;  %v459_v57 = vrot.slane %v377_v18, 6 }
 0x2c9   :  { %v1956_v21 = vpop.eup %1955 }
 0x2ca   :  { %v2401_v22 = vmul.f32 %v1956_v21, %v379_v20  ;;  %v569_v20 = vld [vmem:[#allocation3 + $0x18] sm:$0xc0]  ;;  %v572_v21 = vrot.slane %v568_v19, 6  ;;  %v734_v19 = vld [vmem:[#allocation2 + $0x8] sm:$0x30] }
 0x2cc   :  { %v400_v23 = vrot.slane %v2401_v22, 2 }
 0x2ce   :  { %401 = vrot.lane.b32.xlu2 %v400_v23, %s2176_s0  ;;  %v566_v23 = vld [vmem:[#allocation2 + $0x18] sm:$0x3] }
 0x2cf   :  { %v576_v26 = vadd.f32 %v572_v21, %v566_v23 }
 0x328   :  { %v402_v24 = vpop.permute.xlu2 %401 }
 0x329   :  { %1900 = vmatmul.msk.f32.vlgmr.msrb.gmra.mxu2 %vm311_vm3, %v402_v24  ;;  %1901 = vmatmul.msk.f32.vlgmr.msrb.gmra.mxu3 %vm311_vm3, %v402_v24  ;;  %v573_v24 = vrot.slane %v569_v20, 6 }
 0x32a   :  { %758 = vmatpush.msrb.mxu2 %v2283_v39  ;;  %778 = vmatpush.msrb.mxu3 %v2285_v40 }
 0x32c   :  { %759 = vmatpush.msrb.mxu2 %v2287_v41  ;;  %779 = vmatpush.msrb.mxu3 %v2291_v42 }
 0x32e   :  { %760 = vmatpush.msrb.mxu2 %v2293_v43  ;;  %780 = vmatpush.msrb.mxu3 %v2295_v44 }
 0x330   :  { %761 = vmatpush.msrb.mxu2 %v2301_v45  ;;  %781 = vmatpush.msrb.mxu3 %v2303_v46 }
 0x332   :  { %762 = vmatpush.msrb.mxu2 %v2309_v47  ;;  %782 = vmatpush.msrb.mxu3 %v2311_v48 }
 0x334   :  { %763 = vmatpush.msrb.mxu2 %v2317_v49  ;;  %783 = vmatpush.msrb.mxu3 %v2319_v50 }
 0x336   :  { %764 = vmatpush.msrb.mxu2 %v2325_v51  ;;  %784 = vmatpush.msrb.mxu3 %v2327_v52 }
 0x338   :  { %765 = vmatpush.msrb.mxu2 %v2333_v53  ;;  %785 = vmatpush.msrb.mxu3 %v2335_v54 }
 0x3ac   :  { %v422_v30 = vpop.f32.mrf.mxu2  ;;  %v442_v32 = vpop.f32.mrf.mxu3 }
 0x3ad   :  { %v447_v34 = vrot.slane %v422_v30, 4  ;;  %v448_v35 = vrot.slane %v442_v32, 4  ;;  %v577_v30 = vadd.f32 %v573_v24, %v567_v25 }
 0x3af   :  { %v451_v36 = vadd.f32 %v447_v34, %v398_v33  ;;  %v452_v38 = vadd.f32 %v448_v35, %v399_v37 }
 0x3b1   :  { %1957 = vtanh.f32 %v451_v36 }
 0x3b2   :  { %1959 = vtanh.f32 %v452_v38 }
 0x3b7   :  { %v1958_v55 = vpop.eup %1957 }
 0x3b8   :  { %v455_v56 = vmul.f32 0.5, %v1958_v55  ;;  %v1960_v59 = vpop.eup %1959 }
 0x3b9   :  { %v467_v0 = vmul.f32 0.5, %v1960_v59 }
 0x3ba   :  { %v456_v58 = vadd.f32 0.5, %v455_v56 }
 0x3bb   :  { %v468_v1 = vadd.f32 0.5, %v467_v0 }
 0x3bc   :  { %v457_v60 = vmul.f32 %v1960_v59, %v456_v58  ;;  %v461_v61 = vmul.f32 %v459_v57, %v456_v58 }
 0x3be   :  { %463 = vrot.lane.b32.xlu2 %v457_v60, %s2176_s0 }
 0x418   :  { %v464_v62 = vpop.permute.xlu2 %463 }
 0x419   :  { %v466_v63 = vadd.f32 %v464_v62, %v461_v61  ;;  %v650_v62 = vld [vmem:[#allocation3] sm:$0x30] }
 0x41a   :  { %v654_v0 = vrot.slane %v650_v62, 2  ;;  %v823_v62 = vld [vmem:[#allocation3] sm:$0x3] }
 0x41b   :  { %1961 = vtanh.f32 %v466_v63  ;;  %v548_v7 = vrot.slane %v466_v63, 6  ;;  %v651_v63 = vld [vmem:[#allocation3 + $0x18] sm:$0x30] }
 0x421   :  { %v1962_v2 = vpop.eup %1961 }
 0x422   :  { %v2424_v3 = vmul.f32 %v1962_v2, %v468_v1  ;;  %v648_v1 = vld [vmem:[#allocation2 + $0x18] sm:$0xc]  ;;  %v655_v2 = vrot.slane %v651_v63, 2  ;;  %v824_v63 = vld [vmem:[#allocation3 + $0x18] sm:$0x3] }
 0x424   :  { %v489_v4 = vrot.slane %v2424_v3, 4 }
 0x426   :  { %490 = vrot.lane.b32.xlu0 %v489_v4, %s2176_s0 }
 0x498   :  { %v491_v5 = vpop.permute.xlu0 %490 }
 0x499   :  { %1902 = vmatmul.msk.f32.vlgmr.msra.gmra.mxu0 %vm311_vm3, %v491_v5  ;;  %1903 = vmatmul.msk.f32.vlgmr.msra.gmra.mxu1 %vm311_vm3, %v491_v5  ;;  %v649_v5 = vld [vmem:[#allocation2 + $0x8] sm:$0xc] }
 0x49a   :  { %846 = vmatpush.msra.mxu0 %v2283_v39  ;;  %866 = vmatpush.msra.mxu1 %v2285_v40  ;;  %v479_v39 = vld [vmem:[#allocation3 + $0x8] sm:$0x3]  ;;  %v480_v40 = vld [vmem:[#allocation3 + $0x10] sm:$0x3] }
 0x49c   :  { %847 = vmatpush.msra.mxu0 %v2287_v41  ;;  %867 = vmatpush.msra.mxu1 %v2291_v42  ;;  %v483_v41 = vrot.slane %v479_v39, 2  ;;  %v477_v42 = vld [vmem:[#allocation2 + $0x10] sm:$0xc0] }
 0x49e   :  { %848 = vmatpush.msra.mxu0 %v2293_v43  ;;  %868 = vmatpush.msra.mxu1 %v2295_v44  ;;  %v484_v43 = vrot.slane %v480_v40, 2  ;;  %v658_v40 = vadd.f32 %v654_v0, %v648_v1  ;;  %v827_v0 = vrot.slane %v823_v62, 2  ;;  %v821_v1 = vld [vmem:[#allocation2 + $0x18] sm:$0xc0] }
 0x4a0   :  { %849 = vmatpush.msra.mxu0 %v2301_v45  ;;  %869 = vmatpush.msra.mxu1 %v2303_v46  ;;  %v478_v45 = vld [vmem:[#allocation2] sm:$0xc0] }
 0x4a1   :  { %v488_v6 = vadd.f32 %v484_v43, %v478_v45 }
 0x4a2   :  { %850 = vmatpush.msra.mxu0 %v2309_v47  ;;  %870 = vmatpush.msra.mxu1 %v2311_v48  ;;  %v487_v47 = vadd.f32 %v483_v41, %v477_v42 }
 0x4a4   :  { %851 = vmatpush.msra.mxu0 %v2317_v49  ;;  %871 = vmatpush.msra.mxu1 %v2319_v50 }
 0x4a6   :  { %852 = vmatpush.msra.mxu0 %v2325_v51  ;;  %872 = vmatpush.msra.mxu1 %v2327_v52 }
 0x4a8   :  { %853 = vmatpush.msra.mxu0 %v2333_v53  ;;  %873 = vmatpush.msra.mxu1 %v2335_v54 }
 0x516   :  { %v511_v44 = vpop.f32.mrf.mxu0  ;;  %v531_v46 = vpop.f32.mrf.mxu1 }
 0x517   :  { %v536_v48 = vrot.slane %v511_v44, 2  ;;  %v537_v49 = vrot.slane %v531_v46, 2  ;;  %v659_v44 = vadd.f32 %v655_v2, %v649_v5  ;;  %v828_v2 = vrot.slane %v824_v63, 2  ;;  %v822_v5 = vld [vmem:[#allocation2 + $0x8] sm:$0xc0] }
 0x519   :  { %v540_v50 = vadd.f32 %v536_v48, %v487_v47  ;;  %v541_v51 = vadd.f32 %v537_v49, %v488_v6 }
 0x51b   :  { %1963 = vtanh.f32 %v540_v50 }
 0x51c   :  { %1965 = vtanh.f32 %v541_v51 }
 0x521   :  { %v1964_v52 = vpop.eup %1963 }
 0x522   :  { %v544_v53 = vmul.f32 0.5, %v1964_v52  ;;  %v1966_v8 = vpop.eup %1965 }
 0x523   :  { %v556_v13 = vmul.f32 0.5, %v1966_v8 }
 0x524   :  { %v545_v54 = vadd.f32 0.5, %v544_v53 }
 0x525   :  { %v557_v14 = vadd.f32 0.5, %v556_v13  ;;  %v736_v13 = vld [vmem:[#allocation3 + $0x18] sm:$0xc] }
 0x526   :  { %v546_v9 = vmul.f32 %v1966_v8, %v545_v54  ;;  %v550_v10 = vmul.f32 %v548_v7, %v545_v54 }
 0x528   :  { %552 = vrot.lane.b32.xlu1 %v546_v9, %s2176_s0 }
 0x59a   :  { %v553_v11 = vpop.permute.xlu1 %552 }
 0x59b   :  { %v555_v12 = vadd.f32 %v553_v11, %v550_v10 }
 0x59d   :  { %1967 = vtanh.f32 %v555_v12  ;;  %v631_v34 = vrot.slane %v555_v12, 6  ;;  %v735_v12 = vld [vmem:[#allocation3] sm:$0xc] }
 0x5a3   :  { %v1968_v15 = vpop.eup %1967 }
 0x5a4   :  { %v2447_v16 = vmul.f32 %v1968_v15, %v557_v14  ;;  %v739_v14 = vrot.slane %v735_v12, 6  ;;  %v733_v15 = vld [vmem:[#allocation2 + $0x18] sm:$0x30]  ;;  %v922_v12 = vld [vmem:[#allocation9 + $0x58] sm:$0xff] }
 0x5a6   :  { %v578_v17 = vrot.slane %v2447_v16, 6  ;;  %v743_v21 = vadd.f32 %v739_v14, %v733_v15  ;;  %v1000_v14 = vld [vmem:[#allocation11 + $0x58] sm:$0xff]  ;;  %v920_v15 = vld [vmem:[#allocation9 + $0x48] sm:$0xff] }
 0x5a8   :  { %579 = vrot.lane.b32.xlu2 %v578_v17, %s2176_s0  ;;  %v740_v17 = vrot.slane %v736_v13, 6  ;;  %v999_v13 = vld [vmem:[#allocation11 + $0x50] sm:$0xff] }
 0x602   :  { %v580_v18 = vpop.permute.xlu2 %579 }
 0x603   :  { %1904 = vmatmul.msk.f32.vlgmr.msra.gmra.mxu2 %vm311_vm3, %v580_v18  ;;  %1905 = vmatmul.msk.f32.vlgmr.msra.gmra.mxu3 %vm311_vm3, %v580_v18 }
 0x686   :  { %v600_v27 = vpop.f32.mrf.mxu2  ;;  %v620_v28 = vpop.f32.mrf.mxu3 }
 0x687   :  { %v623_v29 = vadd.f32 %v600_v27, %v576_v26  ;;  %v624_v31 = vadd.f32 %v620_v28, %v577_v30  ;;  %v744_v26 = vadd.f32 %v740_v17, %v734_v19  ;;  %v997_v17 = vld [vmem:[#allocation11 + $0x40] sm:$0xff]  ;;  %v917_v19 = vld [vmem:[#allocation9 + $0x30] sm:$0xff] }
 0x689   :  { %1969 = vtanh.f32 %v623_v29 }
 0x68a   :  { %1971 = vtanh.f32 %v624_v31 }
 0x68f   :  { %v1970_v32 = vpop.eup %1969 }
 0x690   :  { %v627_v33 = vmul.f32 0.5, %v1970_v32  ;;  %v1972_v36 = vpop.eup %1971 }
 0x691   :  { %v639_v57 = vmul.f32 0.5, %v1972_v36 }
 0x692   :  { %v628_v35 = vadd.f32 0.5, %v627_v33 }
 0x693   :  { %v640_v58 = vadd.f32 0.5, %v639_v57 }
 0x694   :  { %v629_v37 = vmul.f32 %v1972_v36, %v628_v35  ;;  %v633_v38 = vmul.f32 %v631_v34, %v628_v35 }
 0x696   :  { %635 = vrot.lane.b32.xlu0 %v629_v37, %s2176_s0 }
 0x708   :  { %v636_v55 = vpop.permute.xlu0 %635 }
 0x709   :  { %v638_v56 = vadd.f32 %v636_v55, %v633_v38 }
 0x70b   :  { %1973 = vtanh.f32 %v638_v56  ;;  %v716_v48 = vrot.slane %v638_v56, 6 }
 0x711   :  { %v1974_v59 = vpop.eup %1973 }
 0x712   :  { %v642_v60 = vmul.f32 %v1974_v59, %v640_v58 }
 0x714   :  { %644 = vrot.lane.b32.xlu1 %v642_v60, %s2176_s0 }
 0x786   :  { %v645_v61 = vpop.permute.xlu1 %644 }
 0x787   :  { %647 = vst.msk [vmem:[#allocation4 + $0x8] sm:$0x3] %vm297_vm2, %v645_v61  ;;  %1906 = vmatmul.msk.f32.vlgmr.msrb.gmra.mxu0 %vm311_vm3, %v645_v61  ;;  %1907 = vmatmul.msk.f32.vlgmr.msrb.gmra.mxu1 %vm311_vm3, %v645_v61 }
 0x804   :  { %v679_v4 = vpop.f32.mrf.mxu0  ;;  %v699_v39 = vpop.f32.mrf.mxu1 }
 0x805   :  { %v704_v41 = vrot.slane %v679_v4, 6  ;;  %v705_v42 = vrot.slane %v699_v39, 6  ;;  %v831_v39 = vadd.f32 %v827_v0, %v821_v1 }
 0x807   :  { %v708_v43 = vadd.f32 %v704_v41, %v658_v40  ;;  %v709_v45 = vadd.f32 %v705_v42, %v659_v44 }
 0x809   :  { %1975 = vtanh.f32 %v708_v43  ;;  %v832_v43 = vadd.f32 %v828_v2, %v822_v5 }
 0x80a   :  { %1977 = vtanh.f32 %v709_v45 }
 0x80f   :  { %v1976_v46 = vpop.eup %1975 }
 0x810   :  { %v712_v47 = vmul.f32 0.5, %v1976_v46  ;;  %v1978_v50 = vpop.eup %1977 }
 0x811   :  { %v724_v7 = vmul.f32 0.5, %v1978_v50 }
 0x812   :  { %v713_v49 = vadd.f32 0.5, %v712_v47 }
 0x813   :  { %v725_v54 = vadd.f32 0.5, %v724_v7  ;;  %v1004_v7 = vld [vmem:[#allocation11 + $0x78] sm:$0xff] }
 0x814   :  { %v714_v6 = vmul.f32 %v1978_v50, %v713_v49  ;;  %v718_v51 = vmul.f32 %v716_v48, %v713_v49  ;;  %1036 = vmatpush.msrb.mxu1 %v1004_v7 }
 0x816   :  { %720 = vrot.lane.b32.xlu2 %v714_v6, %s2176_s0 }
 0x870   :  { %v721_v52 = vpop.permute.xlu2 %720 }
 0x871   :  { %v723_v53 = vadd.f32 %v721_v52, %v718_v51  ;;  %v925_v51 = vld [vmem:[#allocation9 + $0x70] sm:$0xff]  ;;  %v926_v52 = vld [vmem:[#allocation9 + $0x78] sm:$0xff] }
 0x872   :  { %947 = vmatpush.msra.mxu2 %v925_v51  ;;  %970 = vmatpush.msra.mxu3 %v926_v52 }
 0x873   :  { %1979 = vtanh.f32 %v723_v53  ;;  %v804_v30 = vrot.slane %v723_v53, 6  ;;  %v1003_v53 = vld [vmem:[#allocation11 + $0x70] sm:$0xff] }
 0x874   :  { %1013 = vmatpush.msrb.mxu0 %v1003_v53 }
 0x879   :  { %v1980_v8 = vpop.eup %1979 }
 0x87a   :  { %v727_v9 = vmul.f32 %v1980_v8, %v725_v54  ;;  %v923_v54 = vld [vmem:[#allocation9 + $0x60] sm:$0xff]  ;;  %v924_v8 = vld [vmem:[#allocation9 + $0x68] sm:$0xff] }
 0x87b   :  { %948 = vmatpush.msra.mxu2 %v923_v54  ;;  %971 = vmatpush.msra.mxu3 %v924_v8 }
 0x87c   :  { %v745_v10 = vrot.slane %v727_v9, 2 }
 0x87d   :  { %972 = vmatpush.msra.mxu3 %v922_v12  ;;  %v2501_v12 = vld [vmem:[#allocation12 + $0x78] sm:$0xff] }
 0x87e   :  { %746 = vrot.lane.b32.xlu0 %v745_v10, %s2176_s0  ;;  %v1002_v10 = vld [vmem:[#allocation11 + $0x68] sm:$0xff] }
 0x87f   :  { %1037 = vmatpush.msrb.mxu1 %v1002_v10  ;;  %973 = vmatpush.msra.mxu3 %v920_v15  ;;  %v2511_v15 = vld [vmem:[#allocation12 + $0x58] sm:$0xff] }
 0x881   :  { %1038 = vmatpush.msrb.mxu1 %v1000_v14  ;;  %v2507_v14 = vld [vmem:[#allocation12 + $0x68] sm:$0xff] }
 0x8f0   :  { %v747_v11 = vpop.permute.xlu0 %746 }
 0x8f1   :  { %1908 = vmatmul.msk.f32.vlgmr.msrb.gmra.mxu2 %vm311_vm3, %v747_v11  ;;  %1909 = vmatmul.msk.f32.vlgmr.msrb.gmra.mxu3 %vm311_vm3, %v747_v11  ;;  %v921_v11 = vld [vmem:[#allocation9 + $0x50] sm:$0xff] }
 0x8f2   :  { %949 = vmatpush.msra.mxu2 %v921_v11  ;;  %v2499_v11 = vld [vmem:[#allocation12 + $0x70] sm:$0xff] }
 0x974   :  { %v767_v18 = vpop.f32.mrf.mxu2  ;;  %v787_v20 = vpop.f32.mrf.mxu3 }
 0x975   :  { %v792_v23 = vrot.slane %v767_v18, 4  ;;  %v793_v24 = vrot.slane %v787_v20, 4  ;;  %v998_v18 = vld [vmem:[#allocation11 + $0x48] sm:$0xff]  ;;  %v918_v20 = vld [vmem:[#allocation9 + $0x38] sm:$0xff] }
 0x976   :  { %1039 = vmatpush.msrb.mxu1 %v998_v18  ;;  %974 = vmatpush.msra.mxu3 %v918_v20  ;;  %v2519_v18 = vld [vmem:[#allocation12 + $0x48] sm:$0xff]  ;;  %v2527_v20 = vld [vmem:[#allocation12 + $0x38] sm:$0xff] }
 0x977   :  { %v796_v25 = vadd.f32 %v792_v23, %v743_v21  ;;  %v797_v27 = vadd.f32 %v793_v24, %v744_v26  ;;  %v995_v21 = vld [vmem:[#allocation11 + $0x30] sm:$0xff]  ;;  %v996_v23 = vld [vmem:[#allocation11 + $0x38] sm:$0xff]  ;;  %v915_v24 = vld [vmem:[#allocation9 + $0x20] sm:$0xff] }
 0x978   :  { %v993_v26 = vld [vmem:[#allocation11 + $0x20] sm:$0xff]  ;;  %1040 = vmatpush.msrb.mxu1 %v996_v23  ;;  %v2535_v23 = vld [vmem:[#allocation12 + $0x28] sm:$0xff] }
 0x979   :  { %1981 = vtanh.f32 %v796_v25  ;;  %v916_v25 = vld [vmem:[#allocation9 + $0x28] sm:$0xff] }
 0x97a   :  { %1983 = vtanh.f32 %v797_v27  ;;  %v994_v27 = vld [vmem:[#allocation11 + $0x28] sm:$0xff]  ;;  %975 = vmatpush.msra.mxu3 %v916_v25  ;;  %v2543_v25 = vld [vmem:[#allocation12 + $0x18] sm:$0xff] }
 0x97b   :  { %1041 = vmatpush.msrb.mxu1 %v994_v27  ;;  %v2551_v27 = vld [vmem:[#allocation12 + $0x8] sm:$0xff] }
 0x97f   :  { %v1982_v28 = vpop.eup %1981 }
 0x980   :  { %v800_v29 = vmul.f32 0.5, %v1982_v28  ;;  %v1984_v32 = vpop.eup %1983  ;;  %v913_v28 = vld [vmem:[#allocation9 + $0x10] sm:$0xff] }
 0x981   :  { %v812_v37 = vmul.f32 0.5, %v1984_v32 }
 0x982   :  { %v801_v31 = vadd.f32 0.5, %v800_v29  ;;  %v914_v29 = vld [vmem:[#allocation9 + $0x18] sm:$0xff] }
 0x983   :  { %v813_v55 = vadd.f32 0.5, %v812_v37  ;;  %976 = vmatpush.msra.mxu3 %v914_v29 }
 0x984   :  { %v802_v33 = vmul.f32 %v1984_v32, %v801_v31  ;;  %v806_v34 = vmul.f32 %v804_v30, %v801_v31  ;;  %v991_v30 = vld [vmem:[#allocation11 + $0x10] sm:$0xff]  ;;  %v992_v31 = vld [vmem:[#allocation11 + $0x18] sm:$0xff]  ;;  %v911_v32 = vld [vmem:[#allocation9] sm:$0xff] }
 0x985   :  { %1042 = vmatpush.msrb.mxu1 %v992_v31 }
 0x986   :  { %808 = vrot.lane.b32.xlu1 %v802_v33, %s2176_s0  ;;  %v912_v33 = vld [vmem:[#allocation9 + $0x8] sm:$0xff] }
 0x987   :  { %977 = vmatpush.msra.mxu3 %v912_v33 }
 0x989   :  { %1143 = vmatpush.msrb.mxu3 %v2501_v12 }
 0x98b   :  { %1144 = vmatpush.msrb.mxu3 %v2507_v14 }
 0x98d   :  { %1145 = vmatpush.msrb.mxu3 %v2511_v15 }
 0x98e   :  { %383 = vrot.lane.b32.xlu1 %v2401_v22, %s2176_s0 }
 0x98f   :  { %1146 = vmatpush.msrb.mxu3 %v2519_v18 }
 0x991   :  { %1147 = vmatpush.msrb.mxu3 %v2527_v20 }
 0x993   :  { %1148 = vmatpush.msrb.mxu3 %v2535_v23 }
 0x995   :  { %1149 = vmatpush.msrb.mxu3 %v2543_v25 }
 0x996   :  { %729 = vrot.lane.b32.xlu1 %v727_v9, %s2176_s0  ;;  %v1001_v9 = vld [vmem:[#allocation11 + $0x60] sm:$0xff] }
 0x997   :  { %1014 = vmatpush.msrb.mxu0 %v1001_v9  ;;  %1150 = vmatpush.msrb.mxu3 %v2551_v27 }
 0x999   :  { %1015 = vmatpush.msrb.mxu0 %v999_v13  ;;  %v2503_v13 = vld [vmem:[#allocation12 + $0x60] sm:$0xff] }
 0x99b   :  { %1016 = vmatpush.msrb.mxu0 %v997_v17  ;;  %v2517_v17 = vld [vmem:[#allocation12 + $0x40] sm:$0xff] }
 0x99d   :  { %1017 = vmatpush.msrb.mxu0 %v995_v21  ;;  %v2533_v21 = vld [vmem:[#allocation12 + $0x20] sm:$0xff] }
 0x99f   :  { %1018 = vmatpush.msrb.mxu0 %v993_v26  ;;  %v2549_v26 = vld [vmem:[#allocation12] sm:$0xff] }
 0x9a1   :  { %1019 = vmatpush.msrb.mxu0 %v991_v30 }
 0x9f8   :  { %v809_v35 = vpop.permute.xlu1 %808 }
 0x9f9   :  { %v811_v36 = vadd.f32 %v809_v35, %v806_v34  ;;  %v989_v34 = vld [vmem:[#allocation11] sm:$0xff]  ;;  %v990_v35 = vld [vmem:[#allocation11 + $0x8] sm:$0xff] }
 0x9fa   :  { %1020 = vmatpush.msrb.mxu0 %v989_v34  ;;  %1043 = vmatpush.msrb.mxu1 %v990_v35 }
 0x9fb   :  { %1985 = vtanh.f32 %v811_v36  ;;  %v892_v47 = vrot.slane %v811_v36, 6 }
 0xa00   :  { %v384_v38 = vpop.permute.xlu1 %383 }
 0xa01   :  { %v1986_v56 = vpop.eup %1985  ;;  %387 = vst.msk [vmem:[#allocation4] sm:$0xc] %vm386_vm4, %v384_v38 }
 0xa02   :  { %v815_v57 = vmul.f32 %v1986_v56, %v813_v55 }
 0xa04   :  { %v833_v58 = vrot.slane %v815_v57, 4 }
 0xa06   :  { %834 = vrot.lane.b32.xlu2 %v833_v58, %s2176_s0 }
 0xa08   :  { %v730_v59 = vpop.permute.xlu1 %729 }
 0xa09   :  { %732 = vst.msk [vmem:[#allocation4 + $0x8] sm:$0xc] %vm386_vm4, %v730_v59 }
 0xa0e   :  { %472 = vrot.lane.b32.xlu2 %v2424_v3, %s2176_s0 }
 0xa16   :  { %817 = vrot.lane.b32.xlu2 %v815_v57, %s2176_s0 }
 0xa60   :  { %v835_v22 = vpop.permute.xlu2 %834 }
 0xa61   :  { %1910 = vmatmul.msk.f32.vlgmr.msra.gmra.mxu0 %vm311_vm3, %v835_v22  ;;  %1911 = vmatmul.msk.f32.vlgmr.msra.gmra.mxu1 %vm311_vm3, %v835_v22 }
 0xa62   :  { %1215 = vmatpush.msra.mxu0 %v2499_v11  ;;  %1235 = vmatpush.msra.mxu1 %v2501_v12 }
 0xa64   :  { %1216 = vmatpush.msra.mxu0 %v2503_v13  ;;  %1236 = vmatpush.msra.mxu1 %v2507_v14 }
 0xa66   :  { %1237 = vmatpush.msra.mxu1 %v2511_v15 }
 0xa68   :  { %v473_v60 = vpop.permute.xlu2 %472  ;;  %1238 = vmatpush.msra.mxu1 %v2519_v18 }
 0xa69   :  { %476 = vst.msk [vmem:[#allocation4] sm:$0x30] %vm475_vm5, %v473_v60 }
 0xa6a   :  { %1239 = vmatpush.msra.mxu1 %v2527_v20 }
 0xa6c   :  { %1240 = vmatpush.msra.mxu1 %v2535_v23 }
 0xa6e   :  { %1241 = vmatpush.msra.mxu1 %v2543_v25 }
 0xa70   :  { %v818_v61 = vpop.permute.xlu2 %817  ;;  %1242 = vmatpush.msra.mxu1 %v2551_v27 }
 0xa71   :  { %820 = vst.msk [vmem:[#allocation4 + $0x8] sm:$0x30] %vm475_vm5, %v818_v61  ;;  %v927_v61 = vld [vmem:[%s2703_s8] sm:$0x3] }
 0xa72   :  { %v929_v0 = vperm.slane %v927_v61, 0  ;;  %v930_v1 = vperm.slane %v927_v61, 1 }
 0xade   :  { %v855_v4 = vpop.f32.mrf.mxu0  ;;  %v875_v3 = vpop.f32.mrf.mxu1 }
 0xadf   :  { %v880_v40 = vrot.slane %v855_v4, 2  ;;  %v881_v41 = vrot.slane %v875_v3, 2 }
 0xae1   :  { %v884_v42 = vadd.f32 %v880_v40, %v831_v39  ;;  %v885_v44 = vadd.f32 %v881_v41, %v832_v43 }
 0xae3   :  { %1987 = vtanh.f32 %v884_v42 }
 0xae4   :  { %1989 = vtanh.f32 %v885_v44 }
 0xae9   :  { %v1988_v45 = vpop.eup %1987 }
 0xaea   :  { %v888_v46 = vmul.f32 0.5, %v1988_v45  ;;  %v2472_v49 = vpop.eup %1989 }
 0xaeb   :  { %v900_v38 = vmul.f32 0.5, %v2472_v49 }
 0xaec   :  { %v889_v48 = vadd.f32 0.5, %v888_v46 }
 0xaed   :  { %v901_v56 = vadd.f32 0.5, %v900_v38 }
 0xaee   :  { %v890_v50 = vmul.f32 %v2472_v49, %v889_v48  ;;  %v2475_v6 = vmul.f32 %v892_v47, %v889_v48 }
 0xaf0   :  { %896 = vrot.lane.b32.xlu0 %v890_v50, %s2176_s0 }
 0xaf8   :  { %561 = vrot.lane.b32.xlu0 %v2447_v16, %s2176_s0  ;;  %v919_v16 = vld [vmem:[#allocation9 + $0x40] sm:$0xff] }
 0xaf9   :  { %950 = vmatpush.msra.mxu2 %v919_v16  ;;  %v2509_v16 = vld [vmem:[#allocation12 + $0x50] sm:$0xff] }
 0xafa   :  { %1217 = vmatpush.msra.mxu0 %v2509_v16 }
 0xafb   :  { %951 = vmatpush.msra.mxu2 %v917_v19  ;;  %v2525_v19 = vld [vmem:[#allocation12 + $0x30] sm:$0xff] }
 0xafc   :  { %1218 = vmatpush.msra.mxu0 %v2517_v17 }
 0xafd   :  { %952 = vmatpush.msra.mxu2 %v915_v24  ;;  %v2541_v24 = vld [vmem:[#allocation12 + $0x10] sm:$0xff] }
 0xafe   :  { %1219 = vmatpush.msra.mxu0 %v2525_v19 }
 0xaff   :  { %953 = vmatpush.msra.mxu2 %v913_v28 }
 0xb00   :  { %1220 = vmatpush.msra.mxu0 %v2533_v21 }
 0xb01   :  { %954 = vmatpush.msra.mxu2 %v911_v32 }
 0xb02   :  { %1221 = vmatpush.msra.mxu0 %v2541_v24 }
 0xb03   :  { %1123 = vmatpush.msrb.mxu2 %v2499_v11 }
 0xb04   :  { %1222 = vmatpush.msra.mxu0 %v2549_v26 }
 0xb05   :  { %1124 = vmatpush.msrb.mxu2 %v2503_v13 }
 0xb07   :  { %1125 = vmatpush.msrb.mxu2 %v2509_v16 }
 0xb09   :  { %1126 = vmatpush.msrb.mxu2 %v2517_v17 }
 0xb0b   :  { %1127 = vmatpush.msrb.mxu2 %v2525_v19 }
 0xb0d   :  { %1128 = vmatpush.msrb.mxu2 %v2533_v21 }
 0xb0f   :  { %1129 = vmatpush.msrb.mxu2 %v2541_v24 }
 0xb11   :  { %1130 = vmatpush.msrb.mxu2 %v2549_v26 }
 0xb62   :  { %v897_v36 = vpop.permute.xlu0 %896 }
 0xb63   :  { %v899_v37 = vadd.f32 %v897_v36, %v2475_v6 }
 0xb65   :  { %1991 = vtanh.f32 %v899_v37 }
 0xb6a   :  { %v562_v55 = vpop.permute.xlu0 %561 }
 0xb6b   :  { %v1992_v57 = vpop.eup %1991  ;;  %565 = vst.msk [vmem:[#allocation4] sm:$0xc0] %vm564_vm6, %v562_v55 }
 0xb6c   :  { %v903_v58 = vmul.f32 %v1992_v57, %v901_v56 }
 0xb6e   :  { %905 = vrot.lane.b32.xlu0 %v903_v58, %s2176_s0 }
 0xb72   :  { %v909_v59 = vld [vmem:[#allocation4] sm:$0xff] }
 0xb73   :  { %1912 = vmatmul.msk.f32.vlgmr.msra.gmra.mxu2 %vm311_vm3, %v909_v59  ;;  %1914 = vmatmul.msk.f32.vlgmr.msra.gmra.mxu3 %vm311_vm3, %v909_v59 }
 0xb74   :  { %1916 = vmatmul.msk.f32.vlgmr.msrb.gmra.mxu0 %vm311_vm3, %v909_v59  ;;  %1918 = vmatmul.msk.f32.vlgmr.msrb.gmra.mxu1 %vm311_vm3, %v909_v59 }
 0xb75   :  { %1306 = vmatpush.msra.mxu2 %v2499_v11  ;;  %1326 = vmatpush.msra.mxu3 %v2501_v12 }
 0xb76   :  { %1395 = vmatpush.msrb.mxu0 %v2499_v11  ;;  %1415 = vmatpush.msrb.mxu1 %v2501_v12 }
 0xb77   :  { %1307 = vmatpush.msra.mxu2 %v2503_v13  ;;  %1327 = vmatpush.msra.mxu3 %v2507_v14 }
 0xb78   :  { %1396 = vmatpush.msrb.mxu0 %v2503_v13  ;;  %1416 = vmatpush.msrb.mxu1 %v2507_v14 }
 0xb79   :  { %1308 = vmatpush.msra.mxu2 %v2509_v16  ;;  %1328 = vmatpush.msra.mxu3 %v2511_v15 }
 0xb7a   :  { %1397 = vmatpush.msrb.mxu0 %v2509_v16  ;;  %1417 = vmatpush.msrb.mxu1 %v2511_v15 }
 0xb7b   :  { %1309 = vmatpush.msra.mxu2 %v2517_v17  ;;  %1329 = vmatpush.msra.mxu3 %v2519_v18 }
 0xb7c   :  { %1398 = vmatpush.msrb.mxu0 %v2517_v17  ;;  %1418 = vmatpush.msrb.mxu1 %v2519_v18 }
 0xb7d   :  { %1310 = vmatpush.msra.mxu2 %v2525_v19  ;;  %1330 = vmatpush.msra.mxu3 %v2527_v20 }
 0xb7e   :  { %1399 = vmatpush.msrb.mxu0 %v2525_v19  ;;  %1419 = vmatpush.msrb.mxu1 %v2527_v20 }
 0xb7f   :  { %1311 = vmatpush.msra.mxu2 %v2533_v21  ;;  %1331 = vmatpush.msra.mxu3 %v2535_v23 }
 0xb80   :  { %1400 = vmatpush.msrb.mxu0 %v2533_v21  ;;  %1420 = vmatpush.msrb.mxu1 %v2535_v23 }
 0xb81   :  { %1312 = vmatpush.msra.mxu2 %v2541_v24  ;;  %1332 = vmatpush.msra.mxu3 %v2543_v25 }
 0xb82   :  { %1401 = vmatpush.msrb.mxu0 %v2541_v24  ;;  %1421 = vmatpush.msrb.mxu1 %v2543_v25 }
 0xb83   :  { %1313 = vmatpush.msra.mxu2 %v2549_v26  ;;  %1333 = vmatpush.msra.mxu3 %v2551_v27 }
 0xb84   :  { %1402 = vmatpush.msrb.mxu0 %v2549_v26  ;;  %1422 = vmatpush.msrb.mxu1 %v2551_v27 }
 0xbe0   :  { %v906_v22 = vpop.permute.xlu0 %905 }
 0xbe1   :  { %908 = vst.msk [vmem:[#allocation4 + $0x8] sm:$0xc0] %vm564_vm6, %v906_v22 }
 0xbe8   :  { %v910_v60 = vld [vmem:[#allocation4 + $0x8] sm:$0xff] }
 0xbe9   :  { %1913 = vmatmul.msk.f32.gmra.mxu2 %vm311_vm3, %v910_v60  ;;  %1915 = vmatmul.msk.f32.gmra.mxu3 %vm311_vm3, %v910_v60 }
 0xbea   :  { %1917 = vmatmul.msk.f32.gmra.mxu0 %vm311_vm3, %v910_v60  ;;  %1919 = vmatmul.msk.f32.gmra.mxu1 %vm311_vm3, %v910_v60 }
 0xbf1   :  { %v1022_v62 = vpop.f32.mrf.mxu0  ;;  %v1045_v63 = vpop.f32.mrf.mxu1 }
 0xbf2   :  { %1051 = vst [vmem:[#allocation3] sm:$0xff] %v1022_v62 }
 0xbf3   :  { %1052 = vst [vmem:[#allocation3 + $0x18] sm:$0xff] %v1045_v63 }
 0xbf6   :  { %v956_v2 = vpop.f32.mrf.mxu2  ;;  %v979_v4 = vpop.f32.mrf.mxu3 }
 0xbf7   :  { %v957_v5 = vadd.f32 %v956_v2, %v929_v0  ;;  %v980_v3 = vadd.f32 %v979_v4, %v930_v1 }
 0xbf9   :  { %985 = vst [vmem:[#allocation2 + $0x10] sm:$0xff] %v957_v5 }
 0xbfa   :  { %986 = vst [vmem:[#allocation2] sm:$0xff] %v980_v3 }
 0xc00   :  { %v1071_v48 = vld [vmem:[#allocation2 + $0x10] sm:$0x3]  ;;  %v1101_v37 = vld [vmem:[#allocation2 + $0x10] sm:$0xc] }
 0xc01   :  { %v1072_v6 = vld [vmem:[#allocation2] sm:$0x3]  ;;  %v1102_v59 = vld [vmem:[#allocation2] sm:$0xc] }
 0xc67   :  { %v1025_v39 = vpop.f32.mrf.mxu0  ;;  %v1048_v40 = vpop.f32.mrf.mxu1 }
 0xc68   :  { %1053 = vst [vmem:[#allocation3 + $0x8] sm:$0xff] %v1025_v39 }
 0xc69   :  { %1054 = vst [vmem:[#allocation3 + $0x10] sm:$0xff] %v1048_v40 }
 0xc6c   :  { %v959_v41 = vpop.f32.mrf.mxu2  ;;  %v982_v42 = vpop.f32.mrf.mxu3 }
 0xc6d   :  { %v960_v43 = vadd.f32 %v959_v41, %v929_v0  ;;  %v983_v44 = vadd.f32 %v982_v42, %v930_v1 }
 0xc6f   :  { %987 = vst [vmem:[#allocation2 + $0x18] sm:$0xff] %v960_v43  ;;  %v1073_v45 = vld [vmem:[#allocation3 + $0x8] sm:$0xc0]  ;;  %v1103_v33 = vld [vmem:[#allocation3 + $0x8] sm:$0x30] }
 0xc70   :  { %988 = vst [vmem:[#allocation2 + $0x8] sm:$0xff] %v983_v44  ;;  %v1074_v46 = vld [vmem:[#allocation3 + $0x10] sm:$0xc0]  ;;  %v1077_v47 = vrot.slane %v1073_v45, 6  ;;  %v1104_v34 = vld [vmem:[#allocation3 + $0x10] sm:$0x30] }
 0xc71   :  { %v1078_v49 = vrot.slane %v1074_v46, 6  ;;  %v1107_v35 = vrot.slane %v1103_v33, 2  ;;  %v1108_v36 = vrot.slane %v1104_v34, 2 }
 0xc72   :  { %v1081_v50 = vadd.f32 %v1077_v47, %v1071_v48  ;;  %v1192_v47 = vld [vmem:[#allocation3 + $0x8] sm:$0xc]  ;;  %v1193_v48 = vld [vmem:[#allocation3 + $0x10] sm:$0xc] }
 0xc73   :  { %v1082_v51 = vadd.f32 %v1078_v49, %v1072_v6  ;;  %v1111_v56 = vadd.f32 %v1107_v35, %v1101_v37  ;;  %v1112_v60 = vadd.f32 %v1108_v36, %v1102_v59  ;;  %v1196_v49 = vrot.slane %v1192_v47, 6  ;;  %v1190_v6 = vld [vmem:[#allocation2 + $0x10] sm:$0x30] }
 0xc74   :  { %1993 = vtanh.f32 %v1081_v50  ;;  %v1197_v50 = vrot.slane %v1193_v48, 6 }
 0xc75   :  { %1995 = vtanh.f32 %v1082_v51 }
 0xc7a   :  { %v1994_v52 = vpop.eup %1993 }
 0xc7b   :  { %v1085_v53 = vmul.f32 0.5, %v1994_v52  ;;  %v2494_v54 = vpop.eup %1995 }
 0xc7c   :  { %v1088_v28 = vmul.f32 0.5, %v2494_v54 }
 0xc7d   :  { %v1086_v7 = vadd.f32 0.5, %v1085_v53  ;;  %v1200_v53 = vadd.f32 %v1196_v49, %v1190_v6 }
 0xc7e   :  { %v1089_v29 = vadd.f32 0.5, %v1088_v28 }
 0xc7f   :  { %v1087_v8 = vmul.f32 %v2494_v54, %v1086_v7 }
 0xc81   :  { %v1169_v9 = vrot.slane %v1087_v8, 6  ;;  %1997 = vtanh.f32 %v1087_v8  ;;  %v1191_v8 = vld [vmem:[#allocation2] sm:$0x30] }
 0xc83   :  { %1170 = vrot.lane.b32.xlu0 %v1169_v9, %s2176_s0 }
 0xc87   :  { %v1998_v10 = vpop.eup %1997 }
 0xc88   :  { %1092 = vrot.lane.b32.xlu1 %v1998_v10, %s2176_s0  ;;  %v1201_v10 = vadd.f32 %v1197_v50, %v1191_v8 }
 0xcf5   :  { %v1171_v4 = vpop.permute.xlu0 %1170 }
 0xcfa   :  { %v1093_v30 = vpop.permute.xlu1 %1092 }
 0xcfb   :  { %v1095_v31 = vmul.f32 %v1093_v30, %v1089_v29 }
 0xcfd   :  { %1097 = vrot.lane.b32.xlu2 %v1095_v31, %s2176_s0 }
 0xd57   :  { %v1098_v32 = vpop.permute.xlu2 %1097 }
 0xd58   :  { %1100 = vst.msk [vmem:[#allocation5] sm:$0x3] %vm297_vm2, %v1098_v32  ;;  %1920 = vmatmul.msk.f32.vlgmr.msrb.gmra.mxu2 %vm311_vm3, %v1098_v32  ;;  %1921 = vmatmul.msk.f32.vlgmr.msrb.gmra.mxu3 %vm311_vm3, %v1098_v32 }
 0xd59   :  { %1474 = vmatpush.msrb.mxu2 %v2499_v11  ;;  %1494 = vmatpush.msrb.mxu3 %v2501_v12 }
 0xd5b   :  { %1475 = vmatpush.msrb.mxu2 %v2503_v13  ;;  %1495 = vmatpush.msrb.mxu3 %v2507_v14 }
 0xd5d   :  { %1476 = vmatpush.msrb.mxu2 %v2509_v16  ;;  %1496 = vmatpush.msrb.mxu3 %v2511_v15 }
 0xd5f   :  { %1477 = vmatpush.msrb.mxu2 %v2517_v17  ;;  %1497 = vmatpush.msrb.mxu3 %v2519_v18 }
 0xd61   :  { %1478 = vmatpush.msrb.mxu2 %v2525_v19  ;;  %1498 = vmatpush.msrb.mxu3 %v2527_v20 }
 0xd63   :  { %1479 = vmatpush.msrb.mxu2 %v2533_v21  ;;  %1499 = vmatpush.msrb.mxu3 %v2535_v23 }
 0xd65   :  { %1480 = vmatpush.msrb.mxu2 %v2541_v24  ;;  %1500 = vmatpush.msrb.mxu3 %v2543_v25 }
 0xd67   :  { %1481 = vmatpush.msrb.mxu2 %v2549_v26  ;;  %1501 = vmatpush.msrb.mxu3 %v2551_v27 }
 0xddb   :  { %v1132_v38 = vpop.f32.mrf.mxu2  ;;  %v1152_v55 = vpop.f32.mrf.mxu3 }
 0xddc   :  { %v1157_v57 = vrot.slane %v1132_v38, 6  ;;  %v1158_v58 = vrot.slane %v1152_v55, 6 }
 0xdde   :  { %v1161_v22 = vadd.f32 %v1157_v57, %v1111_v56  ;;  %v1162_v61 = vadd.f32 %v1158_v58, %v1112_v60 }
 0xde0   :  { %1999 = vtanh.f32 %v1161_v22 }
 0xde1   :  { %2001 = vtanh.f32 %v1162_v61 }
 0xde6   :  { %v2000_v62 = vpop.eup %1999 }
 0xde7   :  { %v1165_v63 = vmul.f32 0.5, %v2000_v62  ;;  %v2002_v1 = vpop.eup %2001 }
 0xde8   :  { %v1179_v40 = vmul.f32 0.5, %v2002_v1 }
 0xde9   :  { %v1166_v0 = vadd.f32 0.5, %v1165_v63 }
 0xdea   :  { %v1180_v41 = vadd.f32 0.5, %v1179_v40 }
 0xdeb   :  { %v1167_v2 = vmul.f32 %v2002_v1, %v1166_v0  ;;  %v1173_v5 = vmul.f32 %v1171_v4, %v1166_v0 }
 0xded   :  { %1175 = vrot.lane.b32.xlu1 %v1167_v2, %s2176_s0 }
 0xe5f   :  { %v1176_v3 = vpop.permute.xlu1 %1175 }
 0xe60   :  { %v1178_v39 = vadd.f32 %v1176_v3, %v1173_v5 }
 0xe62   :  { %2003 = vtanh.f32 %v1178_v39  ;;  %v1261_v31 = vrot.slane %v1178_v39, 6 }
 0xe68   :  { %v2004_v42 = vpop.eup %2003 }
 0xe69   :  { %v1182_v43 = vmul.f32 %v2004_v42, %v1180_v41  ;;  %v1372_v42 = vld [vmem:[#allocation3] sm:$0xc0] }
 0xe6b   :  { %v1202_v44 = vrot.slane %v1182_v43, 2  ;;  %1184 = vst.sshfl [vmem:[#allocation1] sm:$0xff pattern:$0x73625140] %v1182_v43  ;;  %v1370_v43 = vld [vmem:[#allocation2 + $0x18] sm:$0x3] }
 0xe6d   :  { %1203 = vrot.lane.b32.xlu2 %v1202_v44, %s2176_s0  ;;  %v1373_v44 = vld [vmem:[#allocation3 + $0x18] sm:$0xc0] }
 0xe6e   :  { %v1377_v48 = vrot.slane %v1373_v44, 6 }
 0xe72   :  { %v1186_v45 = vld [vmem:[#allocation1 + $0x1] ss:$4 sm:$0xff] }
 0xe73   :  { %1189 = vst.msk [vmem:[#allocation5] sm:$0x3] %vm1188_vm7, %v1186_v45  ;;  %v1376_v45 = vrot.slane %v1372_v42, 6 }
 0xe75   :  { %v1380_v47 = vadd.f32 %v1376_v45, %v1370_v43 }
 0xec7   :  { %v1204_v46 = vpop.permute.xlu2 %1203 }
 0xec8   :  { %1922 = vmatmul.msk.f32.vlgmr.msra.gmra.mxu0 %vm311_vm3, %v1204_v46  ;;  %1923 = vmatmul.msk.f32.vlgmr.msra.gmra.mxu1 %vm311_vm3, %v1204_v46  ;;  %v1371_v46 = vld [vmem:[#allocation2 + $0x8] sm:$0x3] }
 0xec9   :  { %1563 = vmatpush.msra.mxu0 %v2499_v11  ;;  %1583 = vmatpush.msra.mxu1 %v2501_v12 }
 0xecb   :  { %1564 = vmatpush.msra.mxu0 %v2503_v13  ;;  %1584 = vmatpush.msra.mxu1 %v2507_v14 }
 0xecd   :  { %1565 = vmatpush.msra.mxu0 %v2509_v16  ;;  %1585 = vmatpush.msra.mxu1 %v2511_v15 }
 0xecf   :  { %1566 = vmatpush.msra.mxu0 %v2517_v17  ;;  %1586 = vmatpush.msra.mxu1 %v2519_v18 }
 0xed1   :  { %1567 = vmatpush.msra.mxu0 %v2525_v19  ;;  %1587 = vmatpush.msra.mxu1 %v2527_v20 }
 0xed3   :  { %1568 = vmatpush.msra.mxu0 %v2533_v21  ;;  %1588 = vmatpush.msra.mxu1 %v2535_v23 }
 0xed5   :  { %1569 = vmatpush.msra.mxu0 %v2541_v24  ;;  %1589 = vmatpush.msra.mxu1 %v2543_v25 }
 0xed7   :  { %1570 = vmatpush.msra.mxu0 %v2549_v26  ;;  %1590 = vmatpush.msra.mxu1 %v2551_v27 }
 0xf45   :  { %v1224_v51 = vpop.f32.mrf.mxu0  ;;  %v1244_v52 = vpop.f32.mrf.mxu1 }
 0xf46   :  { %v1249_v7 = vrot.slane %v1224_v51, 4  ;;  %v1250_v54 = vrot.slane %v1244_v52, 4  ;;  %v1381_v51 = vadd.f32 %v1377_v48, %v1371_v46 }
 0xf48   :  { %v1253_v9 = vadd.f32 %v1249_v7, %v1200_v53  ;;  %v1254_v28 = vadd.f32 %v1250_v54, %v1201_v10 }
 0xf4a   :  { %2005 = vtanh.f32 %v1253_v9 }
 0xf4b   :  { %2007 = vtanh.f32 %v1254_v28 }
 0xf50   :  { %v2006_v29 = vpop.eup %2005 }
 0xf51   :  { %v1257_v30 = vmul.f32 0.5, %v2006_v29  ;;  %v2008_v33 = vpop.eup %2007 }
 0xf52   :  { %v1269_v38 = vmul.f32 0.5, %v2008_v33 }
 0xf53   :  { %v1258_v32 = vadd.f32 0.5, %v1257_v30 }
 0xf54   :  { %v1270_v55 = vadd.f32 0.5, %v1269_v38  ;;  %v1455_v38 = vld [vmem:[#allocation3 + $0x18] sm:$0x30] }
 0xf55   :  { %v1259_v34 = vmul.f32 %v2008_v33, %v1258_v32  ;;  %v1263_v35 = vmul.f32 %v1261_v31, %v1258_v32 }
 0xf57   :  { %1265 = vrot.lane.b32.xlu0 %v1259_v34, %s2176_s0 }
 0xfc9   :  { %v1266_v36 = vpop.permute.xlu0 %1265 }
 0xfca   :  { %v1268_v37 = vadd.f32 %v1266_v36, %v1263_v35  ;;  %v1454_v36 = vld [vmem:[#allocation3] sm:$0x30] }
 0xfcc   :  { %2009 = vtanh.f32 %v1268_v37  ;;  %v1352_v60 = vrot.slane %v1268_v37, 6  ;;  %v1452_v37 = vld [vmem:[#allocation2 + $0x18] sm:$0xc] }
 0xfd2   :  { %v2010_v56 = vpop.eup %2009 }
 0xfd3   :  { %v1272_v57 = vmul.f32 %v2010_v56, %v1270_v55  ;;  %v1458_v55 = vrot.slane %v1454_v36, 2  ;;  %v1629_v36 = vld [vmem:[#allocation2 + $0x18] sm:$0xc0] }
 0xfd5   :  { %v1293_v58 = vrot.slane %v1272_v57, 4  ;;  %1274 = vst.sshfl [vmem:[#allocation1] sm:$0xff pattern:$0x73625140] %v1272_v57  ;;  %v1453_v57 = vld [vmem:[#allocation2 + $0x8] sm:$0xc] }
 0xfd7   :  { %1294 = vrot.lane.b32.xlu1 %v1293_v58, %s2176_s0 }
 0xfdc   :  { %v2658_v39 = vld [vmem:[#allocation1 + $0x2] ss:$4 sm:$0xff] }
0x1049   :  { %v1295_v59 = vpop.permute.xlu1 %1294 }
0x104a   :  { %1924 = vmatmul.msk.f32.vlgmr.msra.gmra.mxu2 %vm311_vm3, %v1295_v59  ;;  %1925 = vmatmul.msk.f32.vlgmr.msra.gmra.mxu3 %vm311_vm3, %v1295_v59  ;;  %v1462_v59 = vadd.f32 %v1458_v55, %v1452_v37  ;;  %v1632_v37 = vld [vmem:[#allocation3 + $0x18] sm:$0x3] }
0x104b   :  { %1654 = vmatpush.msra.mxu2 %v2499_v11  ;;  %1674 = vmatpush.msra.mxu3 %v2501_v12  ;;  %v1283_v11 = vld [vmem:[#allocation3 + $0x8] sm:$0x3]  ;;  %v1284_v12 = vld [vmem:[#allocation3 + $0x10] sm:$0x3] }
0x104d   :  { %1655 = vmatpush.msra.mxu2 %v2503_v13  ;;  %1675 = vmatpush.msra.mxu3 %v2507_v14  ;;  %v1287_v13 = vrot.slane %v1283_v11, 2  ;;  %v1288_v14 = vrot.slane %v1284_v12, 2  ;;  %v1459_v12 = vrot.slane %v1455_v38, 2 }
0x104f   :  { %1656 = vmatpush.msra.mxu2 %v2509_v16  ;;  %1676 = vmatpush.msra.mxu3 %v2511_v15  ;;  %v1281_v16 = vld [vmem:[#allocation2 + $0x10] sm:$0xc0] }
0x1051   :  { %1657 = vmatpush.msra.mxu2 %v2517_v17  ;;  %1677 = vmatpush.msra.mxu3 %v2519_v18  ;;  %v1291_v18 = vadd.f32 %v1287_v13, %v1281_v16  ;;  %v1463_v16 = vadd.f32 %v1459_v12, %v1453_v57 }
0x1053   :  { %1658 = vmatpush.msra.mxu2 %v2525_v19  ;;  %1678 = vmatpush.msra.mxu3 %v2527_v20 }
0x1055   :  { %1659 = vmatpush.msra.mxu2 %v2533_v21  ;;  %1679 = vmatpush.msra.mxu3 %v2535_v23  ;;  %v1282_v21 = vld [vmem:[#allocation2] sm:$0xc0] }
0x1056   :  { %v1292_v22 = vadd.f32 %v1288_v14, %v1282_v21 }
0x1057   :  { %1660 = vmatpush.msra.mxu2 %v2541_v24  ;;  %1680 = vmatpush.msra.mxu3 %v2543_v25 }
0x1059   :  { %1661 = vmatpush.msra.mxu2 %v2549_v26  ;;  %1681 = vmatpush.msra.mxu3 %v2551_v27 }
0x10cd   :  { %v1315_v15 = vpop.f32.mrf.mxu2  ;;  %v1335_v17 = vpop.f32.mrf.mxu3 }
0x10ce   :  { %v1340_v19 = vrot.slane %v1315_v15, 2  ;;  %v1341_v20 = vrot.slane %v1335_v17, 2 }
0x10d0   :  { %v1344_v23 = vadd.f32 %v1340_v19, %v1291_v18  ;;  %v1345_v24 = vadd.f32 %v1341_v20, %v1292_v22 }
0x10d2   :  { %2011 = vtanh.f32 %v1344_v23 }
0x10d3   :  { %2013 = vtanh.f32 %v1345_v24 }
0x10d8   :  { %v2012_v25 = vpop.eup %2011 }
0x10d9   :  { %v1348_v26 = vmul.f32 0.5, %v2012_v25  ;;  %v2014_v61 = vpop.eup %2013 }
0x10da   :  { %v1360_v2 = vmul.f32 0.5, %v2014_v61 }
0x10db   :  { %v1349_v27 = vadd.f32 0.5, %v1348_v26 }
0x10dc   :  { %v1361_v4 = vadd.f32 0.5, %v1360_v2  ;;  %v1540_v2 = vld [vmem:[#allocation3] sm:$0xc] }
0x10dd   :  { %v1350_v62 = vmul.f32 %v2014_v61, %v1349_v27  ;;  %v1354_v63 = vmul.f32 %v1352_v60, %v1349_v27 }
0x10df   :  { %1356 = vrot.lane.b32.xlu2 %v1350_v62, %s2176_s0 }
0x1139   :  { %v1357_v0 = vpop.permute.xlu2 %1356 }
0x113a   :  { %v1359_v1 = vadd.f32 %v1357_v0, %v1354_v63 }
0x113c   :  { %2015 = vtanh.f32 %v1359_v1  ;;  %v1435_v54 = vrot.slane %v1359_v1, 6 }
0x1142   :  { %v2016_v5 = vpop.eup %2015 }
0x1143   :  { %v1363_v3 = vmul.f32 %v2016_v5, %v1361_v4  ;;  %v1538_v4 = vld [vmem:[#allocation2 + $0x18] sm:$0x30]  ;;  %v1541_v5 = vld [vmem:[#allocation3 + $0x18] sm:$0xc] }
0x1144   :  { %v1545_v45 = vrot.slane %v1541_v5, 6  ;;  %v1747_v5 = vld [vmem:[#allocation14 + $0xe0] sm:$0xff] }
0x1145   :  { %v1382_v40 = vrot.slane %v1363_v3, 6  ;;  %1365 = vst.sshfl [vmem:[#allocation1] sm:$0xff pattern:$0x73625140] %v1363_v3  ;;  %v1544_v3 = vrot.slane %v1540_v2, 6  ;;  %v1780_v2 = vld [vmem:[#allocation14 + $0x1e8] sm:$0xff] }
0x1147   :  { %1383 = vrot.lane.b32.xlu0 %v1382_v40, %s2176_s0  ;;  %v1548_v43 = vadd.f32 %v1544_v3, %v1538_v4  ;;  %v1731_v4 = vld [vmem:[#allocation14 + $0x60] sm:$0xff] }
0x1148   :  { %v1763_v3 = vld [vmem:[#allocation14 + $0x160] sm:$0xff] }
0x114c   :  { %v1367_v62 = vld [vmem:[#allocation1 + $0x3] ss:$4 sm:$0xff] }
0x11b9   :  { %v1384_v41 = vpop.permute.xlu0 %1383 }
0x11ba   :  { %1926 = vmatmul.msk.f32.vlgmr.msrb.gmra.mxu0 %vm311_vm3, %v1384_v41  ;;  %1927 = vmatmul.msk.f32.vlgmr.msrb.gmra.mxu1 %vm311_vm3, %v1384_v41  ;;  %v1539_v41 = vld [vmem:[#allocation2 + $0x8] sm:$0x30] }
0x11bb   :  { %v1549_v48 = vadd.f32 %v1545_v45, %v1539_v41  ;;  %v1730_v41 = vld [vmem:[#allocation14 + $0x58] sm:$0xff]  ;;  %v1729_v45 = vld [vmem:[#allocation14 + $0x50] sm:$0xff] }
0x1237   :  { %v1404_v49 = vpop.f32.mrf.mxu0  ;;  %v1424_v50 = vpop.f32.mrf.mxu1 }
0x1238   :  { %v1427_v6 = vadd.f32 %v1404_v49, %v1380_v47  ;;  %v1428_v52 = vadd.f32 %v1424_v50, %v1381_v51 }
0x123a   :  { %2017 = vtanh.f32 %v1427_v6 }
0x123b   :  { %2019 = vtanh.f32 %v1428_v52 }
0x1240   :  { %v2018_v53 = vpop.eup %2017 }
0x1241   :  { %v1431_v7 = vmul.f32 0.5, %v2018_v53  ;;  %v2020_v9 = vpop.eup %2019 }
0x1242   :  { %v1443_v31 = vmul.f32 0.5, %v2020_v9 }
0x1243   :  { %v1432_v8 = vadd.f32 0.5, %v1431_v7 }
0x1244   :  { %v1444_v32 = vadd.f32 0.5, %v1443_v31 }
0x1245   :  { %v1433_v10 = vmul.f32 %v2020_v9, %v1432_v8  ;;  %v1437_v28 = vmul.f32 %v1435_v54, %v1432_v8 }
0x1247   :  { %1439 = vrot.lane.b32.xlu1 %v1433_v10, %s2176_s0 }
0x12b9   :  { %v1440_v29 = vpop.permute.xlu1 %1439 }
0x12ba   :  { %v1442_v30 = vadd.f32 %v1440_v29, %v1437_v28 }
0x12bc   :  { %2021 = vtanh.f32 %v1442_v30  ;;  %v1520_v19 = vrot.slane %v1442_v30, 6 }
0x12c2   :  { %v2022_v33 = vpop.eup %2021 }
0x12c3   :  { %v1446_v34 = vmul.f32 %v2022_v33, %v1444_v32 }
0x12c5   :  { %1448 = vrot.lane.b32.xlu2 %v1446_v34, %s2176_s0 }
0x131f   :  { %v1449_v35 = vpop.permute.xlu2 %1448 }
0x1320   :  { %1451 = vst.msk [vmem:[#allocation5 + $0x4] sm:$0x3] %vm297_vm2, %v1449_v35  ;;  %1928 = vmatmul.msk.f32.vlgmr.msrb.gmra.mxu2 %vm311_vm3, %v1449_v35  ;;  %1929 = vmatmul.msk.f32.vlgmr.msrb.gmra.mxu3 %vm311_vm3, %v1449_v35  ;;  %v1631_v35 = vld [vmem:[#allocation3] sm:$0x3] }
0x1321   :  { %v1635_v38 = vrot.slane %v1631_v35, 2  ;;  %v1772_v35 = vld [vmem:[#allocation14 + $0x1a8] sm:$0xff] }
0x13a3   :  { %v1483_v56 = vpop.f32.mrf.mxu2  ;;  %v1503_v58 = vpop.f32.mrf.mxu3 }
0x13a4   :  { %v1508_v11 = vrot.slane %v1483_v56, 6  ;;  %v1509_v13 = vrot.slane %v1503_v58, 6  ;;  %v1630_v56 = vld [vmem:[#allocation2 + $0x8] sm:$0xc0]  ;;  %v1639_v58 = vadd.f32 %v1635_v38, %v1629_v36  ;;  %v1723_v36 = vld [vmem:[#allocation14 + $0x20] sm:$0xff] }
0x13a5   :  { %v1755_v38 = vld [vmem:[#allocation14 + $0x120] sm:$0xff] }
0x13a6   :  { %v1512_v14 = vadd.f32 %v1508_v11, %v1462_v59  ;;  %v1513_v15 = vadd.f32 %v1509_v13, %v1463_v16  ;;  %v1636_v11 = vrot.slane %v1632_v37, 2  ;;  %v1739_v37 = vld [vmem:[#allocation14 + $0xa0] sm:$0xff] }
0x13a8   :  { %2023 = vtanh.f32 %v1512_v14  ;;  %v1640_v14 = vadd.f32 %v1636_v11, %v1630_v56  ;;  %v1722_v56 = vld [vmem:[#allocation14 + $0x18] sm:$0xff] }
0x13a9   :  { %2025 = vtanh.f32 %v1513_v15 }
0x13ae   :  { %v2024_v17 = vpop.eup %2023 }
0x13af   :  { %v1516_v18 = vmul.f32 0.5, %v2024_v17  ;;  %v2026_v21 = vpop.eup %2025 }
0x13b0   :  { %v1528_v26 = vmul.f32 0.5, %v2026_v21 }
0x13b1   :  { %v1517_v20 = vadd.f32 0.5, %v1516_v18 }
0x13b2   :  { %v1529_v60 = vadd.f32 0.5, %v1528_v26  ;;  %v1782_v26 = vld [vmem:[#allocation14 + $0x1f8] sm:$0xff] }
0x13b3   :  { %v1518_v23 = vmul.f32 %v2026_v21, %v1517_v20  ;;  %v1522_v22 = vmul.f32 %v1520_v19, %v1517_v20  ;;  %1857 = vmatpush.msrb.mxu3 %v1782_v26  ;;  %v1767_v26 = vld [vmem:[#allocation14 + $0x180] sm:$0xff] }
0x13b5   :  { %1524 = vrot.lane.b32.xlu0 %v1518_v23, %s2176_s0 }
0x1427   :  { %v1525_v24 = vpop.permute.xlu0 %1524 }
0x1428   :  { %v1527_v25 = vadd.f32 %v1525_v24, %v1522_v22  ;;  %v1734_v22 = vld [vmem:[#allocation14 + $0x78] sm:$0xff] }
0x1429   :  { %v1750_v24 = vld [vmem:[#allocation14 + $0xf8] sm:$0xff]  ;;  %1797 = vmatpush.msrb.mxu0 %v1734_v22 }
0x142a   :  { %2027 = vtanh.f32 %v1527_v25  ;;  %v1609_v51 = vrot.slane %v1527_v25, 6  ;;  %v1766_v25 = vld [vmem:[#allocation14 + $0x178] sm:$0xff]  ;;  %1817 = vmatpush.msrb.mxu1 %v1750_v24  ;;  %v1719_v24 = vld [vmem:[#allocation14] sm:$0xff] }
0x142b   :  { %1837 = vmatpush.msrb.mxu2 %v1766_v25  ;;  %v1735_v25 = vld [vmem:[#allocation14 + $0x80] sm:$0xff] }
0x1430   :  { %v2028_v27 = vpop.eup %2027 }
0x1431   :  { %v1531_v61 = vmul.f32 %v2028_v27, %v1529_v60  ;;  %v1733_v60 = vld [vmem:[#allocation14 + $0x70] sm:$0xff] }
0x1432   :  { %v1749_v27 = vld [vmem:[#allocation14 + $0xf0] sm:$0xff]  ;;  %1798 = vmatpush.msrb.mxu0 %v1733_v60 }
0x1433   :  { %v1550_v63 = vrot.slane %v1531_v61, 2  ;;  %1533 = vst.sshfl [vmem:[#allocation1] sm:$0xff pattern:$0x73625140] %v1531_v61  ;;  %v1765_v61 = vld [vmem:[#allocation14 + $0x170] sm:$0xff]  ;;  %1818 = vmatpush.msrb.mxu1 %v1749_v27 }
0x1434   :  { %1838 = vmatpush.msrb.mxu2 %v1765_v61 }
0x1435   :  { %1551 = vrot.lane.b32.xlu1 %v1550_v63, %s2176_s0  ;;  %v1732_v63 = vld [vmem:[#allocation14 + $0x68] sm:$0xff] }
0x1436   :  { %1799 = vmatpush.msrb.mxu0 %v1732_v63 }
0x1438   :  { %1800 = vmatpush.msrb.mxu0 %v1731_v4  ;;  %v1944_v4 = vld [vmem:[#allocation6] ss:$0 sm:$0xff] }
0x143a   :  { %v1535_v0 = vld [vmem:[#allocation1 + $0x1] ss:$4 sm:$0xff]  ;;  %1801 = vmatpush.msrb.mxu0 %v1730_v41 }
0x143b   :  { %1537 = vst.msk [vmem:[#allocation5 + $0x4] sm:$0x3] %vm1188_vm7, %v1535_v0  ;;  %v1748_v0 = vld [vmem:[#allocation14 + $0xe8] sm:$0xff] }
0x143c   :  { %1819 = vmatpush.msrb.mxu1 %v1748_v0  ;;  %1802 = vmatpush.msrb.mxu0 %v1729_v45 }
0x143e   :  { %1820 = vmatpush.msrb.mxu1 %v1747_v5 }
0x14a7   :  { %v1552_v1 = vpop.permute.xlu1 %1551 }
0x14a8   :  { %1930 = vmatmul.msk.f32.vlgmr.msra.gmra.mxu0 %vm311_vm3, %v1552_v1  ;;  %1931 = vmatmul.msk.f32.vlgmr.msra.gmra.mxu1 %vm311_vm3, %v1552_v1  ;;  %v1764_v1 = vld [vmem:[#allocation14 + $0x168] sm:$0xff] }
0x14a9   :  { %1839 = vmatpush.msrb.mxu2 %v1764_v1 }
0x14ab   :  { %1840 = vmatpush.msrb.mxu2 %v1763_v3 }
0x1525   :  { %v1572_v40 = vpop.f32.mrf.mxu0  ;;  %v1592_v42 = vpop.f32.mrf.mxu1 }
0x1526   :  { %v1597_v44 = vrot.slane %v1572_v40, 4  ;;  %v1598_v46 = vrot.slane %v1592_v42, 4  ;;  %v1779_v40 = vld [vmem:[#allocation14 + $0x1e0] sm:$0xff]  ;;  %v1746_v42 = vld [vmem:[#allocation14 + $0xd8] sm:$0xff] }
0x1527   :  { %1821 = vmatpush.msrb.mxu1 %v1746_v42 }
0x1528   :  { %v1601_v47 = vadd.f32 %v1597_v44, %v1548_v43  ;;  %v1602_v49 = vadd.f32 %v1598_v46, %v1549_v48  ;;  %v1762_v43 = vld [vmem:[#allocation14 + $0x158] sm:$0xff]  ;;  %v1745_v46 = vld [vmem:[#allocation14 + $0xd0] sm:$0xff] }
0x1529   :  { %v1778_v44 = vld [vmem:[#allocation14 + $0x1d8] sm:$0xff]  ;;  %v1777_v48 = vld [vmem:[#allocation14 + $0x1d0] sm:$0xff]  ;;  %1841 = vmatpush.msrb.mxu2 %v1762_v43  ;;  %1822 = vmatpush.msrb.mxu1 %v1745_v46 }
0x152a   :  { %2029 = vtanh.f32 %v1601_v47  ;;  %v1761_v47 = vld [vmem:[#allocation14 + $0x150] sm:$0xff] }
0x152b   :  { %2031 = vtanh.f32 %v1602_v49  ;;  %v1728_v49 = vld [vmem:[#allocation14 + $0x48] sm:$0xff]  ;;  %1842 = vmatpush.msrb.mxu2 %v1761_v47 }
0x152c   :  { %1803 = vmatpush.msrb.mxu0 %v1728_v49 }
0x1530   :  { %v2030_v50 = vpop.eup %2029 }
0x1531   :  { %v1605_v6 = vmul.f32 0.5, %v2030_v50  ;;  %v2032_v53 = vpop.eup %2031  ;;  %v1744_v50 = vld [vmem:[#allocation14 + $0xc8] sm:$0xff] }
0x1532   :  { %v1617_v10 = vmul.f32 0.5, %v2032_v53  ;;  %1823 = vmatpush.msrb.mxu1 %v1744_v50 }
0x1533   :  { %v1606_v52 = vadd.f32 0.5, %v1605_v6  ;;  %v1760_v6 = vld [vmem:[#allocation14 + $0x148] sm:$0xff] }
0x1534   :  { %v1618_v29 = vadd.f32 0.5, %v1617_v10  ;;  %1843 = vmatpush.msrb.mxu2 %v1760_v6  ;;  %v1758_v10 = vld [vmem:[#allocation14 + $0x138] sm:$0xff] }
0x1535   :  { %v1607_v7 = vmul.f32 %v2032_v53, %v1606_v52  ;;  %v1611_v54 = vmul.f32 %v1609_v51, %v1606_v52  ;;  %v1776_v51 = vld [vmem:[#allocation14 + $0x1c8] sm:$0xff]  ;;  %v1727_v52 = vld [vmem:[#allocation14 + $0x40] sm:$0xff] }
0x1536   :  { %v1743_v53 = vld [vmem:[#allocation14 + $0xc0] sm:$0xff]  ;;  %1804 = vmatpush.msrb.mxu0 %v1727_v52 }
0x1537   :  { %1613 = vrot.lane.b32.xlu2 %v1607_v7, %s2176_s0  ;;  %v1759_v7 = vld [vmem:[#allocation14 + $0x140] sm:$0xff]  ;;  %1824 = vmatpush.msrb.mxu1 %v1743_v53 }
0x1538   :  { %1844 = vmatpush.msrb.mxu2 %v1759_v7 }
0x153a   :  { %1845 = vmatpush.msrb.mxu2 %v1758_v10 }
0x153f   :  { %1277 = vrot.lane.b32.xlu2 %v2658_v39, %s2176_s0 }
0x1591   :  { %v1614_v8 = vpop.permute.xlu2 %1613 }
0x1592   :  { %v1616_v9 = vadd.f32 %v1614_v8, %v1611_v54  ;;  %v1775_v54 = vld [vmem:[#allocation14 + $0x1c0] sm:$0xff]  ;;  %v1726_v8 = vld [vmem:[#allocation14 + $0x38] sm:$0xff] }
0x1593   :  { %1805 = vmatpush.msrb.mxu0 %v1726_v8 }
0x1594   :  { %2033 = vtanh.f32 %v1616_v9  ;;  %v1700_v18 = vrot.slane %v1616_v9, 6  ;;  %v1742_v9 = vld [vmem:[#allocation14 + $0xb8] sm:$0xff] }
0x1595   :  { %1825 = vmatpush.msrb.mxu1 %v1742_v9 }
0x1599   :  { %v1278_v28 = vpop.permute.xlu2 %1277 }
0x159a   :  { %v2034_v30 = vpop.eup %2033  ;;  %1280 = vst.msk [vmem:[#allocation5 + $0x2] sm:$0x3] %vm297_vm2, %v1278_v28  ;;  %v1774_v28 = vld [vmem:[#allocation14 + $0x1b8] sm:$0xff] }
0x159b   :  { %1369 = vst.msk [vmem:[#allocation5 + $0x2] sm:$0x3] %vm1188_vm7, %v1367_v62  ;;  %v1620_v31 = vmul.f32 %v2034_v30, %v1618_v29  ;;  %v1781_v62 = vld [vmem:[#allocation14 + $0x1f0] sm:$0xff] }
0x159c   :  { %1858 = vmatpush.msrb.mxu3 %v1781_v62  ;;  %v1725_v29 = vld [vmem:[#allocation14 + $0x30] sm:$0xff] }
0x159d   :  { %v1641_v32 = vrot.slane %v1620_v31, 4  ;;  %1622 = vst.sshfl [vmem:[#allocation1] sm:$0xff pattern:$0x73625140] %v1620_v31  ;;  %v1741_v30 = vld [vmem:[#allocation14 + $0xb0] sm:$0xff]  ;;  %1806 = vmatpush.msrb.mxu0 %v1725_v29 }
0x159e   :  { %1859 = vmatpush.msrb.mxu3 %v1780_v2  ;;  %v1757_v31 = vld [vmem:[#allocation14 + $0x130] sm:$0xff]  ;;  %1826 = vmatpush.msrb.mxu1 %v1741_v30 }
0x159f   :  { %1642 = vrot.lane.b32.xlu0 %v1641_v32, %s2176_s0  ;;  %v1773_v32 = vld [vmem:[#allocation14 + $0x1b0] sm:$0xff]  ;;  %1846 = vmatpush.msrb.mxu2 %v1757_v31 }
0x15a0   :  { %1860 = vmatpush.msrb.mxu3 %v1779_v40 }
0x15a2   :  { %1861 = vmatpush.msrb.mxu3 %v1778_v44 }
0x15a4   :  { %v1624_v33 = vld [vmem:[#allocation1 + $0x2] ss:$4 sm:$0xff]  ;;  %1862 = vmatpush.msrb.mxu3 %v1777_v48 }
0x15a6   :  { %1863 = vmatpush.msrb.mxu3 %v1776_v51 }
0x15a7   :  { %1625 = vrot.lane.b32.xlu0 %v1624_v33, %s2176_s0  ;;  %v1724_v33 = vld [vmem:[#allocation14 + $0x28] sm:$0xff] }
0x15a8   :  { %1864 = vmatpush.msrb.mxu3 %v1775_v54  ;;  %1807 = vmatpush.msrb.mxu0 %v1724_v33 }
0x15aa   :  { %1865 = vmatpush.msrb.mxu3 %v1774_v28  ;;  %1808 = vmatpush.msrb.mxu0 %v1723_v36 }
0x15ac   :  { %1866 = vmatpush.msrb.mxu3 %v1773_v32  ;;  %1809 = vmatpush.msrb.mxu0 %v1722_v56 }
0x15ae   :  { %1867 = vmatpush.msrb.mxu3 %v1772_v35 }
0x1611   :  { %v1643_v39 = vpop.permute.xlu0 %1642 }
0x1612   :  { %1932 = vmatmul.msk.f32.vlgmr.msra.gmra.mxu2 %vm311_vm3, %v1643_v39  ;;  %1933 = vmatmul.msk.f32.vlgmr.msra.gmra.mxu3 %vm311_vm3, %v1643_v39  ;;  %v1740_v39 = vld [vmem:[#allocation14 + $0xa8] sm:$0xff] }
0x1613   :  { %1827 = vmatpush.msrb.mxu1 %v1740_v39 }
0x1615   :  { %1828 = vmatpush.msrb.mxu1 %v1739_v37 }
0x1619   :  { %v1626_v34 = vpop.permute.xlu0 %1625 }
0x161a   :  { %1628 = vst.msk [vmem:[#allocation5 + $0x6] sm:$0x3] %vm297_vm2, %v1626_v34  ;;  %v1756_v34 = vld [vmem:[#allocation14 + $0x128] sm:$0xff] }
0x161b   :  { %1847 = vmatpush.msrb.mxu2 %v1756_v34 }
0x161d   :  { %1848 = vmatpush.msrb.mxu2 %v1755_v38 }
0x1695   :  { %v1663_v55 = vpop.f32.mrf.mxu2  ;;  %v1683_v57 = vpop.f32.mrf.mxu3 }
0x1696   :  { %v1688_v59 = vrot.slane %v1663_v55, 2  ;;  %v1689_v12 = vrot.slane %v1683_v57, 2  ;;  %v1771_v55 = vld [vmem:[#allocation14 + $0x1a0] sm:$0xff]  ;;  %v1738_v57 = vld [vmem:[#allocation14 + $0x98] sm:$0xff] }
0x1697   :  { %1868 = vmatpush.msrb.mxu3 %v1771_v55  ;;  %1829 = vmatpush.msrb.mxu1 %v1738_v57 }
0x1698   :  { %v1692_v13 = vadd.f32 %v1688_v59, %v1639_v58  ;;  %v1693_v16 = vadd.f32 %v1689_v12, %v1640_v14  ;;  %v1754_v58 = vld [vmem:[#allocation14 + $0x118] sm:$0xff]  ;;  %v1721_v12 = vld [vmem:[#allocation14 + $0x10] sm:$0xff] }
0x1699   :  { %v1770_v59 = vld [vmem:[#allocation14 + $0x198] sm:$0xff]  ;;  %1849 = vmatpush.msrb.mxu2 %v1754_v58  ;;  %1810 = vmatpush.msrb.mxu0 %v1721_v12 }
0x169a   :  { %2035 = vtanh.f32 %v1692_v13  ;;  %v1737_v13 = vld [vmem:[#allocation14 + $0x90] sm:$0xff]  ;;  %1869 = vmatpush.msrb.mxu3 %v1770_v59 }
0x169b   :  { %2037 = vtanh.f32 %v1693_v16  ;;  %v1753_v16 = vld [vmem:[#allocation14 + $0x110] sm:$0xff]  ;;  %1830 = vmatpush.msrb.mxu1 %v1737_v13 }
0x169c   :  { %1850 = vmatpush.msrb.mxu2 %v1753_v16 }
0x16a0   :  { %v2036_v15 = vpop.eup %2035 }
0x16a1   :  { %v1696_v17 = vmul.f32 0.5, %v2036_v15  ;;  %v2683_v20 = vpop.eup %2037  ;;  %v1769_v15 = vld [vmem:[#allocation14 + $0x190] sm:$0xff] }
0x16a2   :  { %v1708_v22 = vmul.f32 0.5, %v2683_v20  ;;  %1870 = vmatpush.msrb.mxu3 %v1769_v15 }
0x16a3   :  { %v1697_v19 = vadd.f32 0.5, %v1696_v17  ;;  %v1720_v17 = vld [vmem:[#allocation14 + $0x8] sm:$0xff] }
0x16a4   :  { %1811 = vmatpush.msrb.mxu0 %v1720_v17  ;;  %v1709_v60 = vadd.f32 0.5, %v1708_v22 }
0x16a5   :  { %v1698_v21 = vmul.f32 %v2683_v20, %v1697_v19  ;;  %v2686_v23 = vmul.f32 %v1700_v18, %v1697_v19  ;;  %v1736_v18 = vld [vmem:[#allocation14 + $0x88] sm:$0xff] }
0x16a6   :  { %v1752_v19 = vld [vmem:[#allocation14 + $0x108] sm:$0xff]  ;;  %1831 = vmatpush.msrb.mxu1 %v1736_v18  ;;  %1812 = vmatpush.msrb.mxu0 %v1719_v24 }
0x16a7   :  { %1704 = vrot.lane.b32.xlu1 %v1698_v21, %s2176_s0  ;;  %v1768_v21 = vld [vmem:[#allocation14 + $0x188] sm:$0xff]  ;;  %1851 = vmatpush.msrb.mxu2 %v1752_v19 }
0x16a8   :  { %1871 = vmatpush.msrb.mxu3 %v1768_v21  ;;  %1832 = vmatpush.msrb.mxu1 %v1735_v25 }
0x16aa   :  { %1872 = vmatpush.msrb.mxu3 %v1767_v26 }
0x1719   :  { %v1705_v11 = vpop.permute.xlu1 %1704 }
0x171a   :  { %v1707_v14 = vadd.f32 %v1705_v11, %v2686_v23  ;;  %v1751_v23 = vld [vmem:[#allocation14 + $0x100] sm:$0xff] }
0x171b   :  { %1852 = vmatpush.msrb.mxu2 %v1751_v23 }
0x171c   :  { %2039 = vtanh.f32 %v1707_v14 }
0x1722   :  { %v2040_v27 = vpop.eup %2039 }
0x1723   :  { %v1711_v61 = vmul.f32 %v2040_v27, %v1709_v60 }
0x1725   :  { %1713 = vst.sshfl [vmem:[#allocation1] sm:$0xff pattern:$0x73625140] %v1711_v61 }
0x172c   :  { %v1715_v62 = vld [vmem:[#allocation1 + $0x3] ss:$4 sm:$0xff] }
0x172d   :  { %1717 = vst.msk [vmem:[#allocation5 + $0x6] sm:$0x3] %vm1188_vm7, %v1715_v62 }
0x1734   :  { %v1718_v20 = vld [vmem:[#allocation5] sm:$0xff] }
0x1735   :  { %1788 = vst [vmem:[#allocation1] ss:$4 sm:$0xff] %v1718_v20 }
0x173c   :  { %v1789_v63 = vld.sshfl [vmem:[#allocation1] sm:$0xff pattern:$0x73625140]  ;;  %v1790_v0 = vld.sshfl [vmem:[#allocation1 + $0x8] sm:$0xff pattern:$0x73625140] }
0x173d   :  { %1813 = vmatmul.f32.vlgmr.msrb.gmra.mxu0 %v1789_v63  ;;  %1833 = vmatmul.f32.vlgmr.msrb.gmra.mxu1 %v1790_v0  ;;  %v1791_v1 = vld.sshfl [vmem:[#allocation1 + $0x10] sm:$0xff pattern:$0x73625140]  ;;  %v1792_v2 = vld.sshfl [vmem:[#allocation1 + $0x18] sm:$0xff pattern:$0x73625140] }
0x173e   :  { %1853 = vmatmul.f32.vlgmr.msrb.gmra.mxu2 %v1791_v1  ;;  %1873 = vmatmul.f32.vlgmr.msrb.gmra.mxu3 %v1792_v2 }
0x17ba   :  { %v1814_v5 = vpop.f32.mrf.mxu0  ;;  %v1834_v40 = vpop.f32.mrf.mxu1 }
0x17bb   :  { %v1815_v3 = vadd.f32 %v1944_v4, %v1814_v5 }
0x17bd   :  { %v1835_v41 = vadd.f32 %v1834_v40, %v1815_v3 }
0x17c1   :  { %v1854_v42 = vpop.f32.mrf.mxu2  ;;  %v1874_v44 = vpop.f32.mrf.mxu3 }
0x17c2   :  { %v1855_v43 = vadd.f32 %v1854_v42, %v1835_v41 }
0x17c4   :  { %v1875_v45 = vadd.f32 %v1874_v44, %v1855_v43 }
0x17c6   :  { %1878 = vst.msk [vmem:[%s2706_s11] sm:$0x3] %vm1877_vm8, %v1875_v45 }
0x17c7   :  { %1883 = vsyncpa [#allocation8], 1 }
0x17c8   :  { %1884 = vsyncpa [#allocation10], 1 }
0x17c9   :  { %1885 = vsyncpa [#allocation13], 1 }

</bundles_post_ra>
